<compile_context>
chip_gen: v5e
topology: v5e:2x2
jax: 0.10.0
libtpu: 0.0.40
codegen_flags: <defaults>
</compile_context>

<pallas_src>
import functools
import math

import jax
import jax.numpy as jnp
from jax.experimental import pallas as pl
from jax.experimental.pallas import tpu as pltpu

# Small, shape-consistent configuration (GPT-2 scaled down).
EMBED_DIM = 32
N_LAYERS = 2
N_HEADS = 4
BLOCK_SIZE = 16
VOCAB_SIZE = 128          # multiple of 128 -> lane-dense logits output
LN_EPS = 1e-5


# ----------------------------------------------------------------------------
# Math helpers usable both inside Pallas kernels and in the pure-JAX reference.
# ----------------------------------------------------------------------------
def _layernorm(x, g, b):
    mu = jnp.mean(x, axis=-1, keepdims=True)
    var = jnp.mean((x - mu) ** 2, axis=-1, keepdims=True)
    return (x - mu) * jax.lax.rsqrt(var + LN_EPS) * g + b


def _gelu_tanh(x):
    # tanh-approx GELU: tanh goes to the EUP slot instead of an erf polynomial
    # on the VALU.  Deviation from exact-erf nn.GELU() is <= ~3e-4 absolute.
    c = math.sqrt(2.0 / math.pi)
    return 0.5 * x * (1.0 + jnp.tanh(c * (x + 0.044715 * x * x * x)))


# Order of the packed weight operands fed to the fused kernel.
WEIGHT_ORDER = ("ln1_g", "ln1_b", "wqkv", "bqkv", "wo", "bo",
                "ln2_g", "ln2_b", "wfc", "bfc", "wpr", "bpr",
                "ln_f_g", "ln_f_b", "wte_t")


# ----------------------------------------------------------------------------
# Fused Pallas kernel: all layers + final LN + lm_head for Bp batch rows.
# ----------------------------------------------------------------------------
def gpt2_fused_kernel(x_ref,
                      ln1_g, ln1_b, wqkv, bqkv, wo, bo,
                      ln2_g, ln2_b, wfc, bfc, wpr, bpr,
                      ln_f_g, ln_f_b, wte_t,
                      o_ref, *, n_layers, n_heads, seq_len):
    x = x_ref[...]                                 # (Bp*T, C) residual rows, f32
    M, C = x.shape
    T = seq_len
    Bp = M // T                                    # batch rows in this grid step
    H = n_heads
    Dh = C // H
    bf16 = jnp.bfloat16
    f32 = jnp.float32

    rows = jax.lax.broadcasted_iota(jnp.int32, (T, T), 0)
    cols = jax.lax.broadcasted_iota(jnp.int32, (T, T), 1)
    causal = cols <= rows                          # (T, T), broadcast over heads

    for l in range(n_layers):                      # static loop; weights resident
        # ---- attention sub-layer: x = x + c_proj(attn(ln_1(x))) ----
        h = _layernorm(x, ln1_g[l], ln1_b[l])      # (M, C) f32
        # Single fused QKV matmul with N=3C (1/sqrt(Dh) pre-folded into the Q
        # columns of both weight and bias at pack time).
        qkv = jnp.dot(h.astype(bf16), wqkv[l],
                      preferred_element_type=f32) + bqkv[l]          # (M, 3C)
        ys = []
        for b in range(Bp):                        # static unroll over batch rows
            qb = qkv[b * T:(b + 1) * T]            # (T, 3C) sublane-aligned slice
            # Split heads only where the contraction requires it (static lane
            # slices + leading-dim stack; at real sizes heads would live on a
            # grid axis instead, flash-attention style).
            q = jnp.stack([qb[:, h0 * Dh:(h0 + 1) * Dh] for h0 in range(H)], axis=0)
            k = jnp.stack([qb[:, C + h0 * Dh:C + (h0 + 1) * Dh] for h0 in range(H)], axis=0)
            v = jnp.stack([qb[:, 2 * C + h0 * Dh:2 * C + (h0 + 1) * Dh] for h0 in range(H)], axis=0)
            s = jnp.einsum("hqd,hkd->hqk", q.astype(bf16), k.astype(bf16),
                           preferred_element_type=f32)               # (H, T, T)
            # Finite mask constant (robust even for fully-masked rows).
            s = jnp.where(causal, s, -1e30)
            m = jnp.max(s, axis=-1, keepdims=True)
            p = jnp.exp(s - m)
            p = p * pl.reciprocal(jnp.sum(p, axis=-1, keepdims=True), approx=True)
            y = jnp.einsum("hqk,hkd->hqd", p.astype(bf16), v.astype(bf16),
                           preferred_element_type=f32)               # (H, T, Dh)
            # Merge heads back to (T, C) so the out-projection is one K=C matmul.
            ys.append(jnp.concatenate([y[h0] for h0 in range(H)], axis=-1))
        y_all = jnp.concatenate(ys, axis=0)                          # (M, C)
        x = x + jnp.dot(y_all.astype(bf16), wo[l],
                        preferred_element_type=f32) + bo[l]          # resid drop: id

        # ---- MLP sub-layer: x = x + c_proj(gelu(c_fc(ln_2(x)))) ----
        h = _layernorm(x, ln2_g[l], ln2_b[l])
        f = jnp.dot(h.astype(bf16), wfc[l],
                    preferred_element_type=f32) + bfc[l]             # (M, 4C)
        f = _gelu_tanh(f)
        x = x + jnp.dot(f.astype(bf16), wpr[l],
                        preferred_element_type=f32) + bpr[l]         # dropout: id

    # ---- final LayerNorm + tied lm_head, last token of every row ----
    x_last = jnp.concatenate(
        [x[b * T + T - 1: b * T + T, :] for b in range(Bp)], axis=0)  # (Bp, C)
    hf = _layernorm(x_last, ln_f_g[...], ln_f_b[...])
    logits = jnp.dot(hf.astype(bf16), wte_t[...],
                     preferred_element_type=f32)                      # (Bp, V)
    o_ref[...] = logits[:, None, :].astype(o_ref.dtype)   # one lane-dense store


# ----------------------------------------------------------------------------
# pallas_call wrapper
# ----------------------------------------------------------------------------
def _const_map(ndim):
    zeros = (0,) * ndim
    return lambda g, _z=zeros: _z


def _tensorcores_per_chip():
    """One grid step per TensorCore: 2 on v7x (and v4/v5p megacore), else 1."""
    try:
        dev = jax.devices()[0]
        n = getattr(dev, "num_cores", None)
        if isinstance(n, int) and n >= 1:
            return n
        kind = str(getattr(dev, "device_kind", "")).lower()
        if "v7" in kind or "7x" in kind or "v4" in kind or "v5p" in kind:
            return 2
    except Exception:
        pass
    return 1


def gpt2_forward(packed, idx, *, batch_per_step=None):
    """Token ids (B, T) int32 -> logits (B, 1, VOCAB_SIZE) float32."""
    B, T = idx.shape
    assert T <= BLOCK_SIZE
    C = EMBED_DIM
    # Embedding gathers + positional add are plain-JAX glue; 'drop' is identity.
    # (Could optionally move in-kernel via PrefetchScalarGridSpec scalar idx.)
    x = packed["wte"][idx] + packed["wpe"][:T][None]          # (B, T, C) f32
    x_flat = x.reshape(B * T, C)                              # batch merged into M

    if batch_per_step is None:
        steps = max(1, min(B, _tensorcores_per_chip()))
        while B % steps:
            steps -= 1
        batch_per_step = B // steps
    assert B % batch_per_step == 0
    grid_steps = B // batch_per_step

    weights = [packed[name] for name in WEIGHT_ORDER]

    in_specs = [pl.BlockSpec((batch_per_step * T, C), lambda g: (g, 0))]
    # Weights: full-array blocks with constant index maps -> fetched once and
    # VMEM-resident for all (1-2) grid steps.  At real GPT-2 sizes these would
    # be streamed per layer over an "arbitrary" grid axis (Buffered weight
    # DMAs, 256-granule K/N tiles on v6e/v7x, 64 MiB/TC budget on v7x) --
    # irrelevant at this ~50 KiB toy scale.
    in_specs += [pl.BlockSpec(w.shape, _const_map(w.ndim)) for w in weights]

    return pl.pallas_call(
        functools.partial(gpt2_fused_kernel, n_layers=N_LAYERS,
                          n_heads=N_HEADS, seq_len=T),
        out_shape=jax.ShapeDtypeStruct((B, 1, VOCAB_SIZE), jnp.float32),
        grid=(grid_steps,),                        # exactly num_cores steps
        in_specs=in_specs,
        out_specs=pl.BlockSpec((batch_per_step, 1, VOCAB_SIZE),
                               lambda g: (g, 0, 0)),
        compiler_params=pltpu.CompilerParams(
            dimension_semantics=("parallel",),     # batch shards across TCs on v7x
            vmem_limit_bytes=32 * 1024 * 1024),
    )(x_flat, *weights)


# ----------------------------------------------------------------------------
# Parameter init (canonical, PyTorch-like layout) + one-time packing
# ----------------------------------------------------------------------------
def init_params(key):
    C = EMBED_DIM
    keys = iter(jax.random.split(key, 2 + 4 * N_LAYERS))
    nrm = lambda shape: 0.02 * jax.random.normal(next(keys), shape, jnp.float32)
    params = {
        "wte": nrm((VOCAB_SIZE, C)),               # tied with lm_head weight
        "wpe": nrm((BLOCK_SIZE, C)),
        "ln_f_g": jnp.ones((1, C), jnp.float32),
        "ln_f_b": jnp.zeros((1, C), jnp.float32),
        "blocks": [],
    }
    for _ in range(N_LAYERS):
        params["blocks"].append({
            "ln1_g": jnp.ones((1, C), jnp.float32),
            "ln1_b": jnp.zeros((1, C), jnp.float32),
            "wqkv": nrm((C, 3 * C)), "bqkv": jnp.zeros((1, 3 * C), jnp.float32),
            "wo": nrm((C, C)),       "bo": jnp.zeros((1, C), jnp.float32),
            "ln2_g": jnp.ones((1, C), jnp.float32),
            "ln2_b": jnp.zeros((1, C), jnp.float32),
            "wfc": nrm((C, 4 * C)),  "bfc": jnp.zeros((1, 4 * C), jnp.float32),
            "wpr": nrm((4 * C, C)),  "bpr": jnp.zeros((1, C), jnp.float32),
        })
    return params


def pack_params(params):
    """One-time re-layout: stack layers on a leading axis, fold the 1/sqrt(Dh)
    attention scale into the Q columns of the fused QKV weight/bias,
    pre-transpose the tied lm_head weight, and cast MXU operands to bf16
    (biases / LN params stay f32; accumulation is always f32)."""
    C, H = EMBED_DIM, N_HEADS
    Dh = C // H
    bf16 = jnp.bfloat16
    stk = lambda name: jnp.stack([blk[name] for blk in params["blocks"]])

    qkv_scale = jnp.concatenate([
        jnp.full((C,), 1.0 / math.sqrt(Dh), jnp.float32),   # Q columns
        jnp.ones((2 * C,), jnp.float32)])                   # K, V columns
    wqkv = stk("wqkv") * qkv_scale                           # (L, C, 3C)
    bqkv = stk("bqkv") * qkv_scale                           # (L, 1, 3C)

    return {
        "wte": params["wte"],                      # (V, C) f32, embedding gather
        "wpe": params["wpe"],
        "wte_t": params["wte"].T.astype(bf16),     # tied head, transposed ONCE
        "ln_f_g": params["ln_f_g"], "ln_f_b": params["ln_f_b"],
        "ln1_g": stk("ln1_g"), "ln1_b": stk("ln1_b"),
        "ln2_g": stk("ln2_g"), "ln2_b": stk("ln2_b"),
        "wqkv": wqkv.astype(bf16), "bqkv": bqkv,
        "wo": stk("wo").astype(bf16), "bo": stk("bo"),
        "wfc": stk("wfc").astype(bf16), "bfc": stk("bfc"),
        "wpr": stk("wpr").astype(bf16), "bpr": stk("bpr"),
    }


# ----------------------------------------------------------------------------
# Pure-JAX f32 / exact-erf-GELU reference for correctness checking.
# ----------------------------------------------------------------------------
def reference_forward(params, idx):
    B, T = idx.shape
    C, H = EMBED_DIM, N_HEADS
    Dh = C // H
    x = params["wte"][idx] + params["wpe"][:T][None]
    mask = jnp.tril(jnp.ones((T, T), bool))
    for blk in params["blocks"]:
        h = _layernorm(x, blk["ln1_g"], blk["ln1_b"])
        qkv = h @ blk["wqkv"] + blk["bqkv"]
        q, k, v = jnp.split(qkv, 3, axis=-1)
        q = q.reshape(B, T, H, Dh).transpose(0, 2, 1, 3)
        k = k.reshape(B, T, H, Dh).transpose(0, 2, 1, 3)
        v = v.reshape(B, T, H, Dh).transpose(0, 2, 1, 3)
        s = (q @ k.transpose(0, 1, 3, 2)) / math.sqrt(Dh)
        s = jnp.where(mask, s, -jnp.inf)
        p = jax.nn.softmax(s, axis=-1)
        y = (p @ v).transpose(0, 2, 1, 3).reshape(B, T, C)
        x = x + y @ blk["wo"] + blk["bo"]
        h = _layernorm(x, blk["ln2_g"], blk["ln2_b"])
        x = x + jax.nn.gelu(h @ blk["wfc"] + blk["bfc"],
                            approximate=False) @ blk["wpr"] + blk["bpr"]
    h = _layernorm(x[:, -1, :], params["ln_f_g"], params["ln_f_b"])
    return (h @ params["wte"].T)[:, None, :]


if __name__ == "__main__":
    key = jax.random.PRNGKey(0)
    pkey, ikey = jax.random.split(key)
    params = init_params(pkey)
    packed = pack_params(params)        # one-time weight re-layout (not per-forward)

    B, T = 2, 8
    idx = jax.random.randint(ikey, (B, T), 0, VOCAB_SIZE, dtype=jnp.int32)

    logits = gpt2_forward(packed, idx)
    logits = jax.block_until_ready(logits)

    ref = reference_forward(params, idx)
    assert logits.shape == (B, 1, VOCAB_SIZE), logits.shape
    # Kernel uses bf16 MXU operands (f32 accumulation), pre-scaled bf16 Q
    # weights, tanh-GELU and approx-reciprocal softmax vs. the pure-f32 /
    # exact-erf reference: observed deviation ~1e-3, so 2e-2 is ample margin.
    assert jnp.allclose(logits, ref, atol=2e-2, rtol=2e-2), \
        float(jnp.max(jnp.abs(logits - ref)))
    print("KERNEL_OK")
</pallas_src>

<mosaic_0001>
module attributes {stable_mosaic.version = 11 : i64} {
  func.func @gpt2_fused_kernel(%arg0: i32, %arg1: memref<16x32xf32, #tpu.memory_space<vmem>>, %arg2: memref<2x1x32xf32, #tpu.memory_space<vmem>>, %arg3: memref<2x1x32xf32, #tpu.memory_space<vmem>>, %arg4: memref<2x32x96xbf16, #tpu.memory_space<vmem>>, %arg5: memref<2x1x96xf32, #tpu.memory_space<vmem>>, %arg6: memref<2x32x32xbf16, #tpu.memory_space<vmem>>, %arg7: memref<2x1x32xf32, #tpu.memory_space<vmem>>, %arg8: memref<2x1x32xf32, #tpu.memory_space<vmem>>, %arg9: memref<2x1x32xf32, #tpu.memory_space<vmem>>, %arg10: memref<2x32x128xbf16, #tpu.memory_space<vmem>>, %arg11: memref<2x1x128xf32, #tpu.memory_space<vmem>>, %arg12: memref<2x128x32xbf16, #tpu.memory_space<vmem>>, %arg13: memref<2x1x32xf32, #tpu.memory_space<vmem>>, %arg14: memref<1x32xf32, #tpu.memory_space<vmem>>, %arg15: memref<1x32xf32, #tpu.memory_space<vmem>>, %arg16: memref<32x128xbf16, #tpu.memory_space<vmem>>, %arg17: memref<2x1x128xf32, #tpu.memory_space<vmem>>) attributes {dimension_semantics = [#tpu.dimension_semantics<parallel>], iteration_bounds = array<i64: 1>, scalar_prefetch = 0 : i64, scratch_operands = 0 : i64, tpu.core_type = #tpu.core_type<tc>, window_params = [{transform_indices = @transform_0, window_bounds = array<i64: 16, 32>}, {pipeline_mode = #tpu.pipeline_mode<synchronous>, transform_indices = @transform_1, window_bounds = array<i64: 2, 1, 32>}, {pipeline_mode = #tpu.pipeline_mode<synchronous>, transform_indices = @transform_2, window_bounds = array<i64: 2, 1, 32>}, {pipeline_mode = #tpu.pipeline_mode<synchronous>, transform_indices = @transform_3, window_bounds = array<i64: 2, 32, 96>}, {pipeline_mode = #tpu.pipeline_mode<synchronous>, transform_indices = @transform_4, window_bounds = array<i64: 2, 1, 96>}, {pipeline_mode = #tpu.pipeline_mode<synchronous>, transform_indices = @transform_5, window_bounds = array<i64: 2, 32, 32>}, {pipeline_mode = #tpu.pipeline_mode<synchronous>, transform_indices = @transform_6, window_bounds = array<i64: 2, 1, 32>}, {pipeline_mode = #tpu.pipeline_mode<synchronous>, transform_indices = @transform_7, window_bounds = array<i64: 2, 1, 32>}, {pipeline_mode = #tpu.pipeline_mode<synchronous>, transform_indices = @transform_8, window_bounds = array<i64: 2, 1, 32>}, {pipeline_mode = #tpu.pipeline_mode<synchronous>, transform_indices = @transform_9, window_bounds = array<i64: 2, 32, 128>}, {pipeline_mode = #tpu.pipeline_mode<synchronous>, transform_indices = @transform_10, window_bounds = array<i64: 2, 1, 128>}, {pipeline_mode = #tpu.pipeline_mode<synchronous>, transform_indices = @transform_11, window_bounds = array<i64: 2, 128, 32>}, {pipeline_mode = #tpu.pipeline_mode<synchronous>, transform_indices = @transform_12, window_bounds = array<i64: 2, 1, 32>}, {pipeline_mode = #tpu.pipeline_mode<synchronous>, transform_indices = @transform_13, window_bounds = array<i64: 1, 32>}, {pipeline_mode = #tpu.pipeline_mode<synchronous>, transform_indices = @transform_14, window_bounds = array<i64: 1, 32>}, {pipeline_mode = #tpu.pipeline_mode<synchronous>, transform_indices = @transform_15, window_bounds = array<i64: 32, 128>}, {transform_indices = @transform_16, window_bounds = array<i64: 2, 1, 128>}]} {
    %c0 = arith.constant 0 : index
    %c0_0 = arith.constant 0 : index
    %0 = vector.load %arg1[%c0, %c0_0] : memref<16x32xf32, #tpu.memory_space<vmem>>, vector<16x32xf32>
    %1 = tpu.iota {dimensions = array<i32: 0>} : vector<8x8xi32>
    %2 = tpu.iota {dimensions = array<i32: 1>} : vector<8x8xi32>
    %3 = arith.cmpi sle, %2, %1 : vector<8x8xi32>
    %c0_1 = arith.constant 0 : index
    %c0_2 = arith.constant 0 : index
    %c0_3 = arith.constant 0 : index
    %4 = vector.load %arg2[%c0_1, %c0_2, %c0_3] : memref<2x1x32xf32, #tpu.memory_space<vmem>>, vector<1x1x32xf32>
    %5 = vector.shape_cast %4 : vector<1x1x32xf32> to vector<1x32xf32>
    %c0_4 = arith.constant 0 : index
    %c0_5 = arith.constant 0 : index
    %c0_6 = arith.constant 0 : index
    %6 = vector.load %arg3[%c0_4, %c0_5, %c0_6] : memref<2x1x32xf32, #tpu.memory_space<vmem>>, vector<1x1x32xf32>
    %7 = vector.shape_cast %6 : vector<1x1x32xf32> to vector<1x32xf32>
    %cst = arith.constant dense<0.000000e+00> : vector<16xf32>
    %8 = vector.multi_reduction <add>, %0, %cst [1] : vector<16x32xf32> to vector<16xf32>
    %9 = vector.shape_cast %8 : vector<16xf32> to vector<16x1xf32>
    %cst_7 = arith.constant 3.200000e+01 : f32
    %10 = vector.broadcast %cst_7 : f32 to vector<16x1xf32>
    %11 = arith.divf %9, %10 : vector<16x1xf32>
    %12 = vector.broadcast %11 : vector<16x1xf32> to vector<16x32xf32>
    %13 = arith.subf %0, %12 : vector<16x32xf32>
    %14 = arith.mulf %13, %13 : vector<16x32xf32>
    %cst_8 = arith.constant dense<0.000000e+00> : vector<16xf32>
    %15 = vector.multi_reduction <add>, %14, %cst_8 [1] : vector<16x32xf32> to vector<16xf32>
    %16 = vector.shape_cast %15 : vector<16xf32> to vector<16x1xf32>
    %cst_9 = arith.constant 3.200000e+01 : f32
    %17 = vector.broadcast %cst_9 : f32 to vector<16x1xf32>
    %18 = arith.divf %16, %17 : vector<16x1xf32>
    %19 = vector.broadcast %11 : vector<16x1xf32> to vector<16x32xf32>
    %20 = arith.subf %0, %19 : vector<16x32xf32>
    %cst_10 = arith.constant 9.99999974E-6 : f32
    %21 = vector.broadcast %cst_10 : f32 to vector<16x1xf32>
    %22 = arith.addf %18, %21 : vector<16x1xf32>
    %23 = math.rsqrt %22 : vector<16x1xf32>
    %24 = vector.broadcast %23 : vector<16x1xf32> to vector<16x32xf32>
    %25 = arith.mulf %20, %24 : vector<16x32xf32>
    %26 = vector.broadcast %5 : vector<1x32xf32> to vector<16x32xf32>
    %27 = arith.mulf %25, %26 : vector<16x32xf32>
    %28 = vector.broadcast %7 : vector<1x32xf32> to vector<16x32xf32>
    %29 = arith.addf %27, %28 : vector<16x32xf32>
    %30 = arith.truncf %29 : vector<16x32xf32> to vector<16x32xbf16>
    %c0_11 = arith.constant 0 : index
    %c0_12 = arith.constant 0 : index
    %c0_13 = arith.constant 0 : index
    %31 = vector.load %arg4[%c0_11, %c0_12, %c0_13] : memref<2x32x96xbf16, #tpu.memory_space<vmem>>, vector<1x32x96xbf16>
    %32 = vector.shape_cast %31 : vector<1x32x96xbf16> to vector<32x96xbf16>
    %cst_14 = arith.constant dense<0.000000e+00> : vector<16x96xf32>
    %33 = tpu.matmul %30, %32, %cst_14 {dimension_numbers = #tpu.dot_dimension_numbers<[1], [0], [0], [1], [0, 0, 1, 1], [], []>} : vector<16x32xbf16>, vector<32x96xbf16>, vector<16x96xf32> -> vector<16x96xf32>
    %c0_15 = arith.constant 0 : index
    %c0_16 = arith.constant 0 : index
    %c0_17 = arith.constant 0 : index
    %34 = vector.load %arg5[%c0_15, %c0_16, %c0_17] : memref<2x1x96xf32, #tpu.memory_space<vmem>>, vector<1x1x96xf32>
    %35 = vector.shape_cast %34 : vector<1x1x96xf32> to vector<1x96xf32>
    %36 = vector.broadcast %35 : vector<1x96xf32> to vector<16x96xf32>
    %37 = arith.addf %33, %36 : vector<16x96xf32>
    %38 = vector.extract_strided_slice %37 {offsets = [0, 0], sizes = [8, 96], strides = [1, 1]} : vector<16x96xf32> to vector<8x96xf32>
    %39 = vector.extract_strided_slice %38 {offsets = [0, 0], sizes = [8, 8], strides = [1, 1]} : vector<8x96xf32> to vector<8x8xf32>
    %40 = vector.extract_strided_slice %38 {offsets = [0, 8], sizes = [8, 8], strides = [1, 1]} : vector<8x96xf32> to vector<8x8xf32>
    %41 = vector.extract_strided_slice %38 {offsets = [0, 16], sizes = [8, 8], strides = [1, 1]} : vector<8x96xf32> to vector<8x8xf32>
    %42 = vector.extract_strided_slice %38 {offsets = [0, 24], sizes = [8, 8], strides = [1, 1]} : vector<8x96xf32> to vector<8x8xf32>
    %43 = vector.shape_cast %39 : vector<8x8xf32> to vector<1x8x8xf32>
    %44 = vector.shape_cast %40 : vector<8x8xf32> to vector<1x8x8xf32>
    %45 = vector.shape_cast %41 : vector<8x8xf32> to vector<1x8x8xf32>
    %46 = vector.shape_cast %42 : vector<8x8xf32> to vector<1x8x8xf32>
    %47 = tpu.concatenate %43, %44, %45, %46 in 0 : vector<1x8x8xf32>, vector<1x8x8xf32>, vector<1x8x8xf32>, vector<1x8x8xf32> -> vector<4x8x8xf32>
    %48 = vector.extract_strided_slice %38 {offsets = [0, 32], sizes = [8, 8], strides = [1, 1]} : vector<8x96xf32> to vector<8x8xf32>
    %49 = vector.extract_strided_slice %38 {offsets = [0, 40], sizes = [8, 8], strides = [1, 1]} : vector<8x96xf32> to vector<8x8xf32>
    %50 = vector.extract_strided_slice %38 {offsets = [0, 48], sizes = [8, 8], strides = [1, 1]} : vector<8x96xf32> to vector<8x8xf32>
    %51 = vector.extract_strided_slice %38 {offsets = [0, 56], sizes = [8, 8], strides = [1, 1]} : vector<8x96xf32> to vector<8x8xf32>
    %52 = vector.shape_cast %48 : vector<8x8xf32> to vector<1x8x8xf32>
    %53 = vector.shape_cast %49 : vector<8x8xf32> to vector<1x8x8xf32>
    %54 = vector.shape_cast %50 : vector<8x8xf32> to vector<1x8x8xf32>
    %55 = vector.shape_cast %51 : vector<8x8xf32> to vector<1x8x8xf32>
    %56 = tpu.concatenate %52, %53, %54, %55 in 0 : vector<1x8x8xf32>, vector<1x8x8xf32>, vector<1x8x8xf32>, vector<1x8x8xf32> -> vector<4x8x8xf32>
    %57 = vector.extract_strided_slice %38 {offsets = [0, 64], sizes = [8, 8], strides = [1, 1]} : vector<8x96xf32> to vector<8x8xf32>
    %58 = vector.extract_strided_slice %38 {offsets = [0, 72], sizes = [8, 8], strides = [1, 1]} : vector<8x96xf32> to vector<8x8xf32>
    %59 = vector.extract_strided_slice %38 {offsets = [0, 80], sizes = [8, 8], strides = [1, 1]} : vector<8x96xf32> to vector<8x8xf32>
    %60 = vector.extract_strided_slice %38 {offsets = [0, 88], sizes = [8, 8], strides = [1, 1]} : vector<8x96xf32> to vector<8x8xf32>
    %61 = vector.shape_cast %57 : vector<8x8xf32> to vector<1x8x8xf32>
    %62 = vector.shape_cast %58 : vector<8x8xf32> to vector<1x8x8xf32>
    %63 = vector.shape_cast %59 : vector<8x8xf32> to vector<1x8x8xf32>
    %64 = vector.shape_cast %60 : vector<8x8xf32> to vector<1x8x8xf32>
    %65 = tpu.concatenate %61, %62, %63, %64 in 0 : vector<1x8x8xf32>, vector<1x8x8xf32>, vector<1x8x8xf32>, vector<1x8x8xf32> -> vector<4x8x8xf32>
    %66 = arith.truncf %47 : vector<4x8x8xf32> to vector<4x8x8xbf16>
    %67 = arith.truncf %56 : vector<4x8x8xf32> to vector<4x8x8xbf16>
    "tpu.trace_start"() <{level = 10 : i32, message = "hqd,hkd->hqk"}> : () -> ()
    %cst_18 = arith.constant dense<0.000000e+00> : vector<4x8x8xf32>
    %68 = tpu.matmul %66, %67, %cst_18 {dimension_numbers = #tpu.dot_dimension_numbers<[2], [2], [1], [1], [0, 0, 0, 1, 1, 1], [0], [0]>} : vector<4x8x8xbf16>, vector<4x8x8xbf16>, vector<4x8x8xf32> -> vector<4x8x8xf32>
    %cst_19 = arith.constant -1.000000e+30 : f32
    "tpu.trace_stop"() : () -> ()
    %69 = vector.shape_cast %3 : vector<8x8xi1> to vector<1x8x8xi1>
    %70 = vector.broadcast %69 : vector<1x8x8xi1> to vector<4x8x8xi1>
    %71 = vector.broadcast %cst_19 : f32 to vector<4x8x8xf32>
    %72 = arith.select %70, %68, %71 : vector<4x8x8xi1>, vector<4x8x8xf32>
    %cst_20 = arith.constant dense<0xFF800000> : vector<4x8xf32>
    %73 = vector.multi_reduction <maximumf>, %72, %cst_20 [2] : vector<4x8x8xf32> to vector<4x8xf32>
    %74 = vector.shape_cast %73 : vector<4x8xf32> to vector<4x8x1xf32>
    %75 = vector.broadcast %74 : vector<4x8x1xf32> to vector<4x8x8xf32>
    %76 = arith.subf %72, %75 : vector<4x8x8xf32>
    %77 = math.exp %76 : vector<4x8x8xf32>
    %cst_21 = arith.constant dense<0.000000e+00> : vector<4x8xf32>
    %78 = vector.multi_reduction <add>, %77, %cst_21 [2] : vector<4x8x8xf32> to vector<4x8xf32>
    %79 = vector.shape_cast %78 : vector<4x8xf32> to vector<4x8x1xf32>
    %80 = tpu.reciprocal %79 {approx = true} : vector<4x8x1xf32> -> vector<4x8x1xf32>
    %81 = vector.broadcast %80 : vector<4x8x1xf32> to vector<4x8x8xf32>
    %82 = arith.mulf %77, %81 : vector<4x8x8xf32>
    %83 = arith.truncf %82 : vector<4x8x8xf32> to vector<4x8x8xbf16>
    %84 = arith.truncf %65 : vector<4x8x8xf32> to vector<4x8x8xbf16>
    "tpu.trace_start"() <{level = 10 : i32, message = "hqk,hkd->hqd"}> : () -> ()
    %cst_22 = arith.constant dense<0.000000e+00> : vector<4x8x8xf32>
    %85 = tpu.matmul %83, %84, %cst_22 {dimension_numbers = #tpu.dot_dimension_numbers<[2], [1], [1], [2], [0, 0, 0, 1, 1, 2], [0], [0]>} : vector<4x8x8xbf16>, vector<4x8x8xbf16>, vector<4x8x8xf32> -> vector<4x8x8xf32>
    "tpu.trace_stop"() : () -> ()
    %86 = vector.extract_strided_slice %85 {offsets = [0, 0, 0], sizes = [1, 8, 8], strides = [1, 1, 1]} : vector<4x8x8xf32> to vector<1x8x8xf32>
    %87 = vector.shape_cast %86 : vector<1x8x8xf32> to vector<8x8xf32>
    %88 = vector.extract_strided_slice %85 {offsets = [1, 0, 0], sizes = [1, 8, 8], strides = [1, 1, 1]} : vector<4x8x8xf32> to vector<1x8x8xf32>
    %89 = vector.shape_cast %88 : vector<1x8x8xf32> to vector<8x8xf32>
    %90 = vector.extract_strided_slice %85 {offsets = [2, 0, 0], sizes = [1, 8, 8], strides = [1, 1, 1]} : vector<4x8x8xf32> to vector<1x8x8xf32>
    %91 = vector.shape_cast %90 : vector<1x8x8xf32> to vector<8x8xf32>
    %92 = vector.extract_strided_slice %85 {offsets = [3, 0, 0], sizes = [1, 8, 8], strides = [1, 1, 1]} : vector<4x8x8xf32> to vector<1x8x8xf32>
    %93 = vector.shape_cast %92 : vector<1x8x8xf32> to vector<8x8xf32>
    %94 = tpu.concatenate %87, %89, %91, %93 in 1 : vector<8x8xf32>, vector<8x8xf32>, vector<8x8xf32>, vector<8x8xf32> -> vector<8x32xf32>
    %95 = vector.extract_strided_slice %37 {offsets = [8, 0], sizes = [8, 96], strides = [1, 1]} : vector<16x96xf32> to vector<8x96xf32>
    %96 = vector.extract_strided_slice %95 {offsets = [0, 0], sizes = [8, 8], strides = [1, 1]} : vector<8x96xf32> to vector<8x8xf32>
    %97 = vector.extract_strided_slice %95 {offsets = [0, 8], sizes = [8, 8], strides = [1, 1]} : vector<8x96xf32> to vector<8x8xf32>
    %98 = vector.extract_strided_slice %95 {offsets = [0, 16], sizes = [8, 8], strides = [1, 1]} : vector<8x96xf32> to vector<8x8xf32>
    %99 = vector.extract_strided_slice %95 {offsets = [0, 24], sizes = [8, 8], strides = [1, 1]} : vector<8x96xf32> to vector<8x8xf32>
    %100 = vector.shape_cast %96 : vector<8x8xf32> to vector<1x8x8xf32>
    %101 = vector.shape_cast %97 : vector<8x8xf32> to vector<1x8x8xf32>
    %102 = vector.shape_cast %98 : vector<8x8xf32> to vector<1x8x8xf32>
    %103 = vector.shape_cast %99 : vector<8x8xf32> to vector<1x8x8xf32>
    %104 = tpu.concatenate %100, %101, %102, %103 in 0 : vector<1x8x8xf32>, vector<1x8x8xf32>, vector<1x8x8xf32>, vector<1x8x8xf32> -> vector<4x8x8xf32>
    %105 = vector.extract_strided_slice %95 {offsets = [0, 32], sizes = [8, 8], strides = [1, 1]} : vector<8x96xf32> to vector<8x8xf32>
    %106 = vector.extract_strided_slice %95 {offsets = [0, 40], sizes = [8, 8], strides = [1, 1]} : vector<8x96xf32> to vector<8x8xf32>
    %107 = vector.extract_strided_slice %95 {offsets = [0, 48], sizes = [8, 8], strides = [1, 1]} : vector<8x96xf32> to vector<8x8xf32>
    %108 = vector.extract_strided_slice %95 {offsets = [0, 56], sizes = [8, 8], strides = [1, 1]} : vector<8x96xf32> to vector<8x8xf32>
    %109 = vector.shape_cast %105 : vector<8x8xf32> to vector<1x8x8xf32>
    %110 = vector.shape_cast %106 : vector<8x8xf32> to vector<1x8x8xf32>
    %111 = vector.shape_cast %107 : vector<8x8xf32> to vector<1x8x8xf32>
    %112 = vector.shape_cast %108 : vector<8x8xf32> to vector<1x8x8xf32>
    %113 = tpu.concatenate %109, %110, %111, %112 in 0 : vector<1x8x8xf32>, vector<1x8x8xf32>, vector<1x8x8xf32>, vector<1x8x8xf32> -> vector<4x8x8xf32>
    %114 = vector.extract_strided_slice %95 {offsets = [0, 64], sizes = [8, 8], strides = [1, 1]} : vector<8x96xf32> to vector<8x8xf32>
    %115 = vector.extract_strided_slice %95 {offsets = [0, 72], sizes = [8, 8], strides = [1, 1]} : vector<8x96xf32> to vector<8x8xf32>
    %116 = vector.extract_strided_slice %95 {offsets = [0, 80], sizes = [8, 8], strides = [1, 1]} : vector<8x96xf32> to vector<8x8xf32>
    %117 = vector.extract_strided_slice %95 {offsets = [0, 88], sizes = [8, 8], strides = [1, 1]} : vector<8x96xf32> to vector<8x8xf32>
    %118 = vector.shape_cast %114 : vector<8x8xf32> to vector<1x8x8xf32>
    %119 = vector.shape_cast %115 : vector<8x8xf32> to vector<1x8x8xf32>
    %120 = vector.shape_cast %116 : vector<8x8xf32> to vector<1x8x8xf32>
    %121 = vector.shape_cast %117 : vector<8x8xf32> to vector<1x8x8xf32>
    %122 = tpu.concatenate %118, %119, %120, %121 in 0 : vector<1x8x8xf32>, vector<1x8x8xf32>, vector<1x8x8xf32>, vector<1x8x8xf32> -> vector<4x8x8xf32>
    %123 = arith.truncf %104 : vector<4x8x8xf32> to vector<4x8x8xbf16>
    %124 = arith.truncf %113 : vector<4x8x8xf32> to vector<4x8x8xbf16>
    "tpu.trace_start"() <{level = 10 : i32, message = "hqd,hkd->hqk"}> : () -> ()
    %cst_23 = arith.constant dense<0.000000e+00> : vector<4x8x8xf32>
    %125 = tpu.matmul %123, %124, %cst_23 {dimension_numbers = #tpu.dot_dimension_numbers<[2], [2], [1], [1], [0, 0, 0, 1, 1, 1], [0], [0]>} : vector<4x8x8xbf16>, vector<4x8x8xbf16>, vector<4x8x8xf32> -> vector<4x8x8xf32>
    %cst_24 = arith.constant -1.000000e+30 : f32
    "tpu.trace_stop"() : () -> ()
    %126 = vector.shape_cast %3 : vector<8x8xi1> to vector<1x8x8xi1>
    %127 = vector.broadcast %126 : vector<1x8x8xi1> to vector<4x8x8xi1>
    %128 = vector.broadcast %cst_24 : f32 to vector<4x8x8xf32>
    %129 = arith.select %127, %125, %128 : vector<4x8x8xi1>, vector<4x8x8xf32>
    %cst_25 = arith.constant dense<0xFF800000> : vector<4x8xf32>
    %130 = vector.multi_reduction <maximumf>, %129, %cst_25 [2] : vector<4x8x8xf32> to vector<4x8xf32>
    %131 = vector.shape_cast %130 : vector<4x8xf32> to vector<4x8x1xf32>
    %132 = vector.broadcast %131 : vector<4x8x1xf32> to vector<4x8x8xf32>
    %133 = arith.subf %129, %132 : vector<4x8x8xf32>
    %134 = math.exp %133 : vector<4x8x8xf32>
    %cst_26 = arith.constant dense<0.000000e+00> : vector<4x8xf32>
    %135 = vector.multi_reduction <add>, %134, %cst_26 [2] : vector<4x8x8xf32> to vector<4x8xf32>
    %136 = vector.shape_cast %135 : vector<4x8xf32> to vector<4x8x1xf32>
    %137 = tpu.reciprocal %136 {approx = true} : vector<4x8x1xf32> -> vector<4x8x1xf32>
    %138 = vector.broadcast %137 : vector<4x8x1xf32> to vector<4x8x8xf32>
    %139 = arith.mulf %134, %138 : vector<4x8x8xf32>
    %140 = arith.truncf %139 : vector<4x8x8xf32> to vector<4x8x8xbf16>
    %141 = arith.truncf %122 : vector<4x8x8xf32> to vector<4x8x8xbf16>
    "tpu.trace_start"() <{level = 10 : i32, message = "hqk,hkd->hqd"}> : () -> ()
    %cst_27 = arith.constant dense<0.000000e+00> : vector<4x8x8xf32>
    %142 = tpu.matmul %140, %141, %cst_27 {dimension_numbers = #tpu.dot_dimension_numbers<[2], [1], [1], [2], [0, 0, 0, 1, 1, 2], [0], [0]>} : vector<4x8x8xbf16>, vector<4x8x8xbf16>, vector<4x8x8xf32> -> vector<4x8x8xf32>
    "tpu.trace_stop"() : () -> ()
    %143 = vector.extract_strided_slice %142 {offsets = [0, 0, 0], sizes = [1, 8, 8], strides = [1, 1, 1]} : vector<4x8x8xf32> to vector<1x8x8xf32>
    %144 = vector.shape_cast %143 : vector<1x8x8xf32> to vector<8x8xf32>
    %145 = vector.extract_strided_slice %142 {offsets = [1, 0, 0], sizes = [1, 8, 8], strides = [1, 1, 1]} : vector<4x8x8xf32> to vector<1x8x8xf32>
    %146 = vector.shape_cast %145 : vector<1x8x8xf32> to vector<8x8xf32>
    %147 = vector.extract_strided_slice %142 {offsets = [2, 0, 0], sizes = [1, 8, 8], strides = [1, 1, 1]} : vector<4x8x8xf32> to vector<1x8x8xf32>
    %148 = vector.shape_cast %147 : vector<1x8x8xf32> to vector<8x8xf32>
    %149 = vector.extract_strided_slice %142 {offsets = [3, 0, 0], sizes = [1, 8, 8], strides = [1, 1, 1]} : vector<4x8x8xf32> to vector<1x8x8xf32>
    %150 = vector.shape_cast %149 : vector<1x8x8xf32> to vector<8x8xf32>
    %151 = tpu.concatenate %144, %146, %148, %150 in 1 : vector<8x8xf32>, vector<8x8xf32>, vector<8x8xf32>, vector<8x8xf32> -> vector<8x32xf32>
    %152 = tpu.concatenate %94, %151 in 0 : vector<8x32xf32>, vector<8x32xf32> -> vector<16x32xf32>
    %153 = arith.truncf %152 : vector<16x32xf32> to vector<16x32xbf16>
    %c0_28 = arith.constant 0 : index
    %c0_29 = arith.constant 0 : index
    %c0_30 = arith.constant 0 : index
    %154 = vector.load %arg6[%c0_28, %c0_29, %c0_30] : memref<2x32x32xbf16, #tpu.memory_space<vmem>>, vector<1x32x32xbf16>
    %155 = vector.shape_cast %154 : vector<1x32x32xbf16> to vector<32x32xbf16>
    %cst_31 = arith.constant dense<0.000000e+00> : vector<16x32xf32>
    %156 = tpu.matmul %153, %155, %cst_31 {dimension_numbers = #tpu.dot_dimension_numbers<[1], [0], [0], [1], [0, 0, 1, 1], [], []>} : vector<16x32xbf16>, vector<32x32xbf16>, vector<16x32xf32> -> vector<16x32xf32>
    %157 = arith.addf %0, %156 : vector<16x32xf32>
    %c0_32 = arith.constant 0 : index
    %c0_33 = arith.constant 0 : index
    %c0_34 = arith.constant 0 : index
    %158 = vector.load %arg7[%c0_32, %c0_33, %c0_34] : memref<2x1x32xf32, #tpu.memory_space<vmem>>, vector<1x1x32xf32>
    %159 = vector.shape_cast %158 : vector<1x1x32xf32> to vector<1x32xf32>
    %160 = vector.broadcast %159 : vector<1x32xf32> to vector<16x32xf32>
    %161 = arith.addf %157, %160 : vector<16x32xf32>
    %c0_35 = arith.constant 0 : index
    %c0_36 = arith.constant 0 : index
    %c0_37 = arith.constant 0 : index
    %162 = vector.load %arg8[%c0_35, %c0_36, %c0_37] : memref<2x1x32xf32, #tpu.memory_space<vmem>>, vector<1x1x32xf32>
    %163 = vector.shape_cast %162 : vector<1x1x32xf32> to vector<1x32xf32>
    %c0_38 = arith.constant 0 : index
    %c0_39 = arith.constant 0 : index
    %c0_40 = arith.constant 0 : index
    %164 = vector.load %arg9[%c0_38, %c0_39, %c0_40] : memref<2x1x32xf32, #tpu.memory_space<vmem>>, vector<1x1x32xf32>
    %165 = vector.shape_cast %164 : vector<1x1x32xf32> to vector<1x32xf32>
    %cst_41 = arith.constant dense<0.000000e+00> : vector<16xf32>
    %166 = vector.multi_reduction <add>, %161, %cst_41 [1] : vector<16x32xf32> to vector<16xf32>
    %167 = vector.shape_cast %166 : vector<16xf32> to vector<16x1xf32>
    %cst_42 = arith.constant 3.200000e+01 : f32
    %168 = vector.broadcast %cst_42 : f32 to vector<16x1xf32>
    %169 = arith.divf %167, %168 : vector<16x1xf32>
    %170 = vector.broadcast %169 : vector<16x1xf32> to vector<16x32xf32>
    %171 = arith.subf %161, %170 : vector<16x32xf32>
    %172 = arith.mulf %171, %171 : vector<16x32xf32>
    %cst_43 = arith.constant dense<0.000000e+00> : vector<16xf32>
    %173 = vector.multi_reduction <add>, %172, %cst_43 [1] : vector<16x32xf32> to vector<16xf32>
    %174 = vector.shape_cast %173 : vector<16xf32> to vector<16x1xf32>
    %cst_44 = arith.constant 3.200000e+01 : f32
    %175 = vector.broadcast %cst_44 : f32 to vector<16x1xf32>
    %176 = arith.divf %174, %175 : vector<16x1xf32>
    %177 = vector.broadcast %169 : vector<16x1xf32> to vector<16x32xf32>
    %178 = arith.subf %161, %177 : vector<16x32xf32>
    %cst_45 = arith.constant 9.99999974E-6 : f32
    %179 = vector.broadcast %cst_45 : f32 to vector<16x1xf32>
    %180 = arith.addf %176, %179 : vector<16x1xf32>
    %181 = math.rsqrt %180 : vector<16x1xf32>
    %182 = vector.broadcast %181 : vector<16x1xf32> to vector<16x32xf32>
    %183 = arith.mulf %178, %182 : vector<16x32xf32>
    %184 = vector.broadcast %163 : vector<1x32xf32> to vector<16x32xf32>
    %185 = arith.mulf %183, %184 : vector<16x32xf32>
    %186 = vector.broadcast %165 : vector<1x32xf32> to vector<16x32xf32>
    %187 = arith.addf %185, %186 : vector<16x32xf32>
    %188 = arith.truncf %187 : vector<16x32xf32> to vector<16x32xbf16>
    %c0_46 = arith.constant 0 : index
    %c0_47 = arith.constant 0 : index
    %c0_48 = arith.constant 0 : index
    %189 = vector.load %arg10[%c0_46, %c0_47, %c0_48] : memref<2x32x128xbf16, #tpu.memory_space<vmem>>, vector<1x32x128xbf16>
    %190 = vector.shape_cast %189 : vector<1x32x128xbf16> to vector<32x128xbf16>
    %cst_49 = arith.constant dense<0.000000e+00> : vector<16x128xf32>
    %191 = tpu.matmul %188, %190, %cst_49 {dimension_numbers = #tpu.dot_dimension_numbers<[1], [0], [0], [1], [0, 0, 1, 1], [], []>} : vector<16x32xbf16>, vector<32x128xbf16>, vector<16x128xf32> -> vector<16x128xf32>
    %c0_50 = arith.constant 0 : index
    %c0_51 = arith.constant 0 : index
    %c0_52 = arith.constant 0 : index
    %192 = vector.load %arg11[%c0_50, %c0_51, %c0_52] : memref<2x1x128xf32, #tpu.memory_space<vmem>>, vector<1x1x128xf32>
    %193 = vector.shape_cast %192 : vector<1x1x128xf32> to vector<1x128xf32>
    %194 = vector.broadcast %193 : vector<1x128xf32> to vector<16x128xf32>
    %195 = arith.addf %191, %194 : vector<16x128xf32>
    %cst_53 = arith.constant 5.000000e-01 : f32
    %196 = vector.broadcast %cst_53 : f32 to vector<16x128xf32>
    %197 = arith.mulf %196, %195 : vector<16x128xf32>
    %cst_54 = arith.constant 4.471500e-02 : f32
    %198 = vector.broadcast %cst_54 : f32 to vector<16x128xf32>
    %199 = arith.mulf %198, %195 : vector<16x128xf32>
    %200 = arith.mulf %199, %195 : vector<16x128xf32>
    %201 = arith.mulf %200, %195 : vector<16x128xf32>
    %202 = arith.addf %195, %201 : vector<16x128xf32>
    %cst_55 = arith.constant 0.797884583 : f32
    %203 = vector.broadcast %cst_55 : f32 to vector<16x128xf32>
    %204 = arith.mulf %203, %202 : vector<16x128xf32>
    %205 = math.tanh %204 : vector<16x128xf32>
    %cst_56 = arith.constant 1.000000e+00 : f32
    %206 = vector.broadcast %cst_56 : f32 to vector<16x128xf32>
    %207 = arith.addf %206, %205 : vector<16x128xf32>
    %208 = arith.mulf %197, %207 : vector<16x128xf32>
    %209 = arith.truncf %208 : vector<16x128xf32> to vector<16x128xbf16>
    %c0_57 = arith.constant 0 : index
    %c0_58 = arith.constant 0 : index
    %c0_59 = arith.constant 0 : index
    %210 = vector.load %arg12[%c0_57, %c0_58, %c0_59] : memref<2x128x32xbf16, #tpu.memory_space<vmem>>, vector<1x128x32xbf16>
    %211 = vector.shape_cast %210 : vector<1x128x32xbf16> to vector<128x32xbf16>
    %cst_60 = arith.constant dense<0.000000e+00> : vector<16x32xf32>
    %212 = tpu.matmul %209, %211, %cst_60 {dimension_numbers = #tpu.dot_dimension_numbers<[1], [0], [0], [1], [0, 0, 1, 1], [], []>} : vector<16x128xbf16>, vector<128x32xbf16>, vector<16x32xf32> -> vector<16x32xf32>
    %213 = arith.addf %161, %212 : vector<16x32xf32>
    %c0_61 = arith.constant 0 : index
    %c0_62 = arith.constant 0 : index
    %c0_63 = arith.constant 0 : index
    %214 = vector.load %arg13[%c0_61, %c0_62, %c0_63] : memref<2x1x32xf32, #tpu.memory_space<vmem>>, vector<1x1x32xf32>
    %215 = vector.shape_cast %214 : vector<1x1x32xf32> to vector<1x32xf32>
    %216 = vector.broadcast %215 : vector<1x32xf32> to vector<16x32xf32>
    %217 = arith.addf %213, %216 : vector<16x32xf32>
    %c1 = arith.constant 1 : index
    %c0_64 = arith.constant 0 : index
    %c0_65 = arith.constant 0 : index
    %218 = vector.load %arg2[%c1, %c0_64, %c0_65] : memref<2x1x32xf32, #tpu.memory_space<vmem>>, vector<1x1x32xf32>
    %219 = vector.shape_cast %218 : vector<1x1x32xf32> to vector<1x32xf32>
    %c1_66 = arith.constant 1 : index
    %c0_67 = arith.constant 0 : index
    %c0_68 = arith.constant 0 : index
    %220 = vector.load %arg3[%c1_66, %c0_67, %c0_68] : memref<2x1x32xf32, #tpu.memory_space<vmem>>, vector<1x1x32xf32>
    %221 = vector.shape_cast %220 : vector<1x1x32xf32> to vector<1x32xf32>
    %cst_69 = arith.constant dense<0.000000e+00> : vector<16xf32>
    %222 = vector.multi_reduction <add>, %217, %cst_69 [1] : vector<16x32xf32> to vector<16xf32>
    %223 = vector.shape_cast %222 : vector<16xf32> to vector<16x1xf32>
    %cst_70 = arith.constant 3.200000e+01 : f32
    %224 = vector.broadcast %cst_70 : f32 to vector<16x1xf32>
    %225 = arith.divf %223, %224 : vector<16x1xf32>
    %226 = vector.broadcast %225 : vector<16x1xf32> to vector<16x32xf32>
    %227 = arith.subf %217, %226 : vector<16x32xf32>
    %228 = arith.mulf %227, %227 : vector<16x32xf32>
    %cst_71 = arith.constant dense<0.000000e+00> : vector<16xf32>
    %229 = vector.multi_reduction <add>, %228, %cst_71 [1] : vector<16x32xf32> to vector<16xf32>
    %230 = vector.shape_cast %229 : vector<16xf32> to vector<16x1xf32>
    %cst_72 = arith.constant 3.200000e+01 : f32
    %231 = vector.broadcast %cst_72 : f32 to vector<16x1xf32>
    %232 = arith.divf %230, %231 : vector<16x1xf32>
    %233 = vector.broadcast %225 : vector<16x1xf32> to vector<16x32xf32>
    %234 = arith.subf %217, %233 : vector<16x32xf32>
    %cst_73 = arith.constant 9.99999974E-6 : f32
    %235 = vector.broadcast %cst_73 : f32 to vector<16x1xf32>
    %236 = arith.addf %232, %235 : vector<16x1xf32>
    %237 = math.rsqrt %236 : vector<16x1xf32>
    %238 = vector.broadcast %237 : vector<16x1xf32> to vector<16x32xf32>
    %239 = arith.mulf %234, %238 : vector<16x32xf32>
    %240 = vector.broadcast %219 : vector<1x32xf32> to vector<16x32xf32>
    %241 = arith.mulf %239, %240 : vector<16x32xf32>
    %242 = vector.broadcast %221 : vector<1x32xf32> to vector<16x32xf32>
    %243 = arith.addf %241, %242 : vector<16x32xf32>
    %244 = arith.truncf %243 : vector<16x32xf32> to vector<16x32xbf16>
    %c1_74 = arith.constant 1 : index
    %c0_75 = arith.constant 0 : index
    %c0_76 = arith.constant 0 : index
    %245 = vector.load %arg4[%c1_74, %c0_75, %c0_76] : memref<2x32x96xbf16, #tpu.memory_space<vmem>>, vector<1x32x96xbf16>
    %246 = vector.shape_cast %245 : vector<1x32x96xbf16> to vector<32x96xbf16>
    %cst_77 = arith.constant dense<0.000000e+00> : vector<16x96xf32>
    %247 = tpu.matmul %244, %246, %cst_77 {dimension_numbers = #tpu.dot_dimension_numbers<[1], [0], [0], [1], [0, 0, 1, 1], [], []>} : vector<16x32xbf16>, vector<32x96xbf16>, vector<16x96xf32> -> vector<16x96xf32>
    %c1_78 = arith.constant 1 : index
    %c0_79 = arith.constant 0 : index
    %c0_80 = arith.constant 0 : index
    %248 = vector.load %arg5[%c1_78, %c0_79, %c0_80] : memref<2x1x96xf32, #tpu.memory_space<vmem>>, vector<1x1x96xf32>
    %249 = vector.shape_cast %248 : vector<1x1x96xf32> to vector<1x96xf32>
    %250 = vector.broadcast %249 : vector<1x96xf32> to vector<16x96xf32>
    %251 = arith.addf %247, %250 : vector<16x96xf32>
    %252 = vector.extract_strided_slice %251 {offsets = [0, 0], sizes = [8, 96], strides = [1, 1]} : vector<16x96xf32> to vector<8x96xf32>
    %253 = vector.extract_strided_slice %252 {offsets = [0, 0], sizes = [8, 8], strides = [1, 1]} : vector<8x96xf32> to vector<8x8xf32>
    %254 = vector.extract_strided_slice %252 {offsets = [0, 8], sizes = [8, 8], strides = [1, 1]} : vector<8x96xf32> to vector<8x8xf32>
    %255 = vector.extract_strided_slice %252 {offsets = [0, 16], sizes = [8, 8], strides = [1, 1]} : vector<8x96xf32> to vector<8x8xf32>
    %256 = vector.extract_strided_slice %252 {offsets = [0, 24], sizes = [8, 8], strides = [1, 1]} : vector<8x96xf32> to vector<8x8xf32>
    %257 = vector.shape_cast %253 : vector<8x8xf32> to vector<1x8x8xf32>
    %258 = vector.shape_cast %254 : vector<8x8xf32> to vector<1x8x8xf32>
    %259 = vector.shape_cast %255 : vector<8x8xf32> to vector<1x8x8xf32>
    %260 = vector.shape_cast %256 : vector<8x8xf32> to vector<1x8x8xf32>
    %261 = tpu.concatenate %257, %258, %259, %260 in 0 : vector<1x8x8xf32>, vector<1x8x8xf32>, vector<1x8x8xf32>, vector<1x8x8xf32> -> vector<4x8x8xf32>
    %262 = vector.extract_strided_slice %252 {offsets = [0, 32], sizes = [8, 8], strides = [1, 1]} : vector<8x96xf32> to vector<8x8xf32>
    %263 = vector.extract_strided_slice %252 {offsets = [0, 40], sizes = [8, 8], strides = [1, 1]} : vector<8x96xf32> to vector<8x8xf32>
    %264 = vector.extract_strided_slice %252 {offsets = [0, 48], sizes = [8, 8], strides = [1, 1]} : vector<8x96xf32> to vector<8x8xf32>
    %265 = vector.extract_strided_slice %252 {offsets = [0, 56], sizes = [8, 8], strides = [1, 1]} : vector<8x96xf32> to vector<8x8xf32>
    %266 = vector.shape_cast %262 : vector<8x8xf32> to vector<1x8x8xf32>
    %267 = vector.shape_cast %263 : vector<8x8xf32> to vector<1x8x8xf32>
    %268 = vector.shape_cast %264 : vector<8x8xf32> to vector<1x8x8xf32>
    %269 = vector.shape_cast %265 : vector<8x8xf32> to vector<1x8x8xf32>
    %270 = tpu.concatenate %266, %267, %268, %269 in 0 : vector<1x8x8xf32>, vector<1x8x8xf32>, vector<1x8x8xf32>, vector<1x8x8xf32> -> vector<4x8x8xf32>
    %271 = vector.extract_strided_slice %252 {offsets = [0, 64], sizes = [8, 8], strides = [1, 1]} : vector<8x96xf32> to vector<8x8xf32>
    %272 = vector.extract_strided_slice %252 {offsets = [0, 72], sizes = [8, 8], strides = [1, 1]} : vector<8x96xf32> to vector<8x8xf32>
    %273 = vector.extract_strided_slice %252 {offsets = [0, 80], sizes = [8, 8], strides = [1, 1]} : vector<8x96xf32> to vector<8x8xf32>
    %274 = vector.extract_strided_slice %252 {offsets = [0, 88], sizes = [8, 8], strides = [1, 1]} : vector<8x96xf32> to vector<8x8xf32>
    %275 = vector.shape_cast %271 : vector<8x8xf32> to vector<1x8x8xf32>
    %276 = vector.shape_cast %272 : vector<8x8xf32> to vector<1x8x8xf32>
    %277 = vector.shape_cast %273 : vector<8x8xf32> to vector<1x8x8xf32>
    %278 = vector.shape_cast %274 : vector<8x8xf32> to vector<1x8x8xf32>
    %279 = tpu.concatenate %275, %276, %277, %278 in 0 : vector<1x8x8xf32>, vector<1x8x8xf32>, vector<1x8x8xf32>, vector<1x8x8xf32> -> vector<4x8x8xf32>
    %280 = arith.truncf %261 : vector<4x8x8xf32> to vector<4x8x8xbf16>
    %281 = arith.truncf %270 : vector<4x8x8xf32> to vector<4x8x8xbf16>
    "tpu.trace_start"() <{level = 10 : i32, message = "hqd,hkd->hqk"}> : () -> ()
    %cst_81 = arith.constant dense<0.000000e+00> : vector<4x8x8xf32>
    %282 = tpu.matmul %280, %281, %cst_81 {dimension_numbers = #tpu.dot_dimension_numbers<[2], [2], [1], [1], [0, 0, 0, 1, 1, 1], [0], [0]>} : vector<4x8x8xbf16>, vector<4x8x8xbf16>, vector<4x8x8xf32> -> vector<4x8x8xf32>
    %cst_82 = arith.constant -1.000000e+30 : f32
    "tpu.trace_stop"() : () -> ()
    %283 = vector.shape_cast %3 : vector<8x8xi1> to vector<1x8x8xi1>
    %284 = vector.broadcast %283 : vector<1x8x8xi1> to vector<4x8x8xi1>
    %285 = vector.broadcast %cst_82 : f32 to vector<4x8x8xf32>
    %286 = arith.select %284, %282, %285 : vector<4x8x8xi1>, vector<4x8x8xf32>
    %cst_83 = arith.constant dense<0xFF800000> : vector<4x8xf32>
    %287 = vector.multi_reduction <maximumf>, %286, %cst_83 [2] : vector<4x8x8xf32> to vector<4x8xf32>
    %288 = vector.shape_cast %287 : vector<4x8xf32> to vector<4x8x1xf32>
    %289 = vector.broadcast %288 : vector<4x8x1xf32> to vector<4x8x8xf32>
    %290 = arith.subf %286, %289 : vector<4x8x8xf32>
    %291 = math.exp %290 : vector<4x8x8xf32>
    %cst_84 = arith.constant dense<0.000000e+00> : vector<4x8xf32>
    %292 = vector.multi_reduction <add>, %291, %cst_84 [2] : vector<4x8x8xf32> to vector<4x8xf32>
    %293 = vector.shape_cast %292 : vector<4x8xf32> to vector<4x8x1xf32>
    %294 = tpu.reciprocal %293 {approx = true} : vector<4x8x1xf32> -> vector<4x8x1xf32>
    %295 = vector.broadcast %294 : vector<4x8x1xf32> to vector<4x8x8xf32>
    %296 = arith.mulf %291, %295 : vector<4x8x8xf32>
    %297 = arith.truncf %296 : vector<4x8x8xf32> to vector<4x8x8xbf16>
    %298 = arith.truncf %279 : vector<4x8x8xf32> to vector<4x8x8xbf16>
    "tpu.trace_start"() <{level = 10 : i32, message = "hqk,hkd->hqd"}> : () -> ()
    %cst_85 = arith.constant dense<0.000000e+00> : vector<4x8x8xf32>
    %299 = tpu.matmul %297, %298, %cst_85 {dimension_numbers = #tpu.dot_dimension_numbers<[2], [1], [1], [2], [0, 0, 0, 1, 1, 2], [0], [0]>} : vector<4x8x8xbf16>, vector<4x8x8xbf16>, vector<4x8x8xf32> -> vector<4x8x8xf32>
    "tpu.trace_stop"() : () -> ()
    %300 = vector.extract_strided_slice %299 {offsets = [0, 0, 0], sizes = [1, 8, 8], strides = [1, 1, 1]} : vector<4x8x8xf32> to vector<1x8x8xf32>
    %301 = vector.shape_cast %300 : vector<1x8x8xf32> to vector<8x8xf32>
    %302 = vector.extract_strided_slice %299 {offsets = [1, 0, 0], sizes = [1, 8, 8], strides = [1, 1, 1]} : vector<4x8x8xf32> to vector<1x8x8xf32>
    %303 = vector.shape_cast %302 : vector<1x8x8xf32> to vector<8x8xf32>
    %304 = vector.extract_strided_slice %299 {offsets = [2, 0, 0], sizes = [1, 8, 8], strides = [1, 1, 1]} : vector<4x8x8xf32> to vector<1x8x8xf32>
    %305 = vector.shape_cast %304 : vector<1x8x8xf32> to vector<8x8xf32>
    %306 = vector.extract_strided_slice %299 {offsets = [3, 0, 0], sizes = [1, 8, 8], strides = [1, 1, 1]} : vector<4x8x8xf32> to vector<1x8x8xf32>
    %307 = vector.shape_cast %306 : vector<1x8x8xf32> to vector<8x8xf32>
    %308 = tpu.concatenate %301, %303, %305, %307 in 1 : vector<8x8xf32>, vector<8x8xf32>, vector<8x8xf32>, vector<8x8xf32> -> vector<8x32xf32>
    %309 = vector.extract_strided_slice %251 {offsets = [8, 0], sizes = [8, 96], strides = [1, 1]} : vector<16x96xf32> to vector<8x96xf32>
    %310 = vector.extract_strided_slice %309 {offsets = [0, 0], sizes = [8, 8], strides = [1, 1]} : vector<8x96xf32> to vector<8x8xf32>
    %311 = vector.extract_strided_slice %309 {offsets = [0, 8], sizes = [8, 8], strides = [1, 1]} : vector<8x96xf32> to vector<8x8xf32>
    %312 = vector.extract_strided_slice %309 {offsets = [0, 16], sizes = [8, 8], strides = [1, 1]} : vector<8x96xf32> to vector<8x8xf32>
    %313 = vector.extract_strided_slice %309 {offsets = [0, 24], sizes = [8, 8], strides = [1, 1]} : vector<8x96xf32> to vector<8x8xf32>
    %314 = vector.shape_cast %310 : vector<8x8xf32> to vector<1x8x8xf32>
    %315 = vector.shape_cast %311 : vector<8x8xf32> to vector<1x8x8xf32>
    %316 = vector.shape_cast %312 : vector<8x8xf32> to vector<1x8x8xf32>
    %317 = vector.shape_cast %313 : vector<8x8xf32> to vector<1x8x8xf32>
    %318 = tpu.concatenate %314, %315, %316, %317 in 0 : vector<1x8x8xf32>, vector<1x8x8xf32>, vector<1x8x8xf32>, vector<1x8x8xf32> -> vector<4x8x8xf32>
    %319 = vector.extract_strided_slice %309 {offsets = [0, 32], sizes = [8, 8], strides = [1, 1]} : vector<8x96xf32> to vector<8x8xf32>
    %320 = vector.extract_strided_slice %309 {offsets = [0, 40], sizes = [8, 8], strides = [1, 1]} : vector<8x96xf32> to vector<8x8xf32>
    %321 = vector.extract_strided_slice %309 {offsets = [0, 48], sizes = [8, 8], strides = [1, 1]} : vector<8x96xf32> to vector<8x8xf32>
    %322 = vector.extract_strided_slice %309 {offsets = [0, 56], sizes = [8, 8], strides = [1, 1]} : vector<8x96xf32> to vector<8x8xf32>
    %323 = vector.shape_cast %319 : vector<8x8xf32> to vector<1x8x8xf32>
    %324 = vector.shape_cast %320 : vector<8x8xf32> to vector<1x8x8xf32>
    %325 = vector.shape_cast %321 : vector<8x8xf32> to vector<1x8x8xf32>
    %326 = vector.shape_cast %322 : vector<8x8xf32> to vector<1x8x8xf32>
    %327 = tpu.concatenate %323, %324, %325, %326 in 0 : vector<1x8x8xf32>, vector<1x8x8xf32>, vector<1x8x8xf32>, vector<1x8x8xf32> -> vector<4x8x8xf32>
    %328 = vector.extract_strided_slice %309 {offsets = [0, 64], sizes = [8, 8], strides = [1, 1]} : vector<8x96xf32> to vector<8x8xf32>
    %329 = vector.extract_strided_slice %309 {offsets = [0, 72], sizes = [8, 8], strides = [1, 1]} : vector<8x96xf32> to vector<8x8xf32>
    %330 = vector.extract_strided_slice %309 {offsets = [0, 80], sizes = [8, 8], strides = [1, 1]} : vector<8x96xf32> to vector<8x8xf32>
    %331 = vector.extract_strided_slice %309 {offsets = [0, 88], sizes = [8, 8], strides = [1, 1]} : vector<8x96xf32> to vector<8x8xf32>
    %332 = vector.shape_cast %328 : vector<8x8xf32> to vector<1x8x8xf32>
    %333 = vector.shape_cast %329 : vector<8x8xf32> to vector<1x8x8xf32>
    %334 = vector.shape_cast %330 : vector<8x8xf32> to vector<1x8x8xf32>
    %335 = vector.shape_cast %331 : vector<8x8xf32> to vector<1x8x8xf32>
    %336 = tpu.concatenate %332, %333, %334, %335 in 0 : vector<1x8x8xf32>, vector<1x8x8xf32>, vector<1x8x8xf32>, vector<1x8x8xf32> -> vector<4x8x8xf32>
    %337 = arith.truncf %318 : vector<4x8x8xf32> to vector<4x8x8xbf16>
    %338 = arith.truncf %327 : vector<4x8x8xf32> to vector<4x8x8xbf16>
    "tpu.trace_start"() <{level = 10 : i32, message = "hqd,hkd->hqk"}> : () -> ()
    %cst_86 = arith.constant dense<0.000000e+00> : vector<4x8x8xf32>
    %339 = tpu.matmul %337, %338, %cst_86 {dimension_numbers = #tpu.dot_dimension_numbers<[2], [2], [1], [1], [0, 0, 0, 1, 1, 1], [0], [0]>} : vector<4x8x8xbf16>, vector<4x8x8xbf16>, vector<4x8x8xf32> -> vector<4x8x8xf32>
    %cst_87 = arith.constant -1.000000e+30 : f32
    "tpu.trace_stop"() : () -> ()
    %340 = vector.shape_cast %3 : vector<8x8xi1> to vector<1x8x8xi1>
    %341 = vector.broadcast %340 : vector<1x8x8xi1> to vector<4x8x8xi1>
    %342 = vector.broadcast %cst_87 : f32 to vector<4x8x8xf32>
    %343 = arith.select %341, %339, %342 : vector<4x8x8xi1>, vector<4x8x8xf32>
    %cst_88 = arith.constant dense<0xFF800000> : vector<4x8xf32>
    %344 = vector.multi_reduction <maximumf>, %343, %cst_88 [2] : vector<4x8x8xf32> to vector<4x8xf32>
    %345 = vector.shape_cast %344 : vector<4x8xf32> to vector<4x8x1xf32>
    %346 = vector.broadcast %345 : vector<4x8x1xf32> to vector<4x8x8xf32>
    %347 = arith.subf %343, %346 : vector<4x8x8xf32>
    %348 = math.exp %347 : vector<4x8x8xf32>
    %cst_89 = arith.constant dense<0.000000e+00> : vector<4x8xf32>
    %349 = vector.multi_reduction <add>, %348, %cst_89 [2] : vector<4x8x8xf32> to vector<4x8xf32>
    %350 = vector.shape_cast %349 : vector<4x8xf32> to vector<4x8x1xf32>
    %351 = tpu.reciprocal %350 {approx = true} : vector<4x8x1xf32> -> vector<4x8x1xf32>
    %352 = vector.broadcast %351 : vector<4x8x1xf32> to vector<4x8x8xf32>
    %353 = arith.mulf %348, %352 : vector<4x8x8xf32>
    %354 = arith.truncf %353 : vector<4x8x8xf32> to vector<4x8x8xbf16>
    %355 = arith.truncf %336 : vector<4x8x8xf32> to vector<4x8x8xbf16>
    "tpu.trace_start"() <{level = 10 : i32, message = "hqk,hkd->hqd"}> : () -> ()
    %cst_90 = arith.constant dense<0.000000e+00> : vector<4x8x8xf32>
    %356 = tpu.matmul %354, %355, %cst_90 {dimension_numbers = #tpu.dot_dimension_numbers<[2], [1], [1], [2], [0, 0, 0, 1, 1, 2], [0], [0]>} : vector<4x8x8xbf16>, vector<4x8x8xbf16>, vector<4x8x8xf32> -> vector<4x8x8xf32>
    "tpu.trace_stop"() : () -> ()
    %357 = vector.extract_strided_slice %356 {offsets = [0, 0, 0], sizes = [1, 8, 8], strides = [1, 1, 1]} : vector<4x8x8xf32> to vector<1x8x8xf32>
    %358 = vector.shape_cast %357 : vector<1x8x8xf32> to vector<8x8xf32>
    %359 = vector.extract_strided_slice %356 {offsets = [1, 0, 0], sizes = [1, 8, 8], strides = [1, 1, 1]} : vector<4x8x8xf32> to vector<1x8x8xf32>
    %360 = vector.shape_cast %359 : vector<1x8x8xf32> to vector<8x8xf32>
    %361 = vector.extract_strided_slice %356 {offsets = [2, 0, 0], sizes = [1, 8, 8], strides = [1, 1, 1]} : vector<4x8x8xf32> to vector<1x8x8xf32>
    %362 = vector.shape_cast %361 : vector<1x8x8xf32> to vector<8x8xf32>
    %363 = vector.extract_strided_slice %356 {offsets = [3, 0, 0], sizes = [1, 8, 8], strides = [1, 1, 1]} : vector<4x8x8xf32> to vector<1x8x8xf32>
    %364 = vector.shape_cast %363 : vector<1x8x8xf32> to vector<8x8xf32>
    %365 = tpu.concatenate %358, %360, %362, %364 in 1 : vector<8x8xf32>, vector<8x8xf32>, vector<8x8xf32>, vector<8x8xf32> -> vector<8x32xf32>
    %366 = tpu.concatenate %308, %365 in 0 : vector<8x32xf32>, vector<8x32xf32> -> vector<16x32xf32>
    %367 = arith.truncf %366 : vector<16x32xf32> to vector<16x32xbf16>
    %c1_91 = arith.constant 1 : index
    %c0_92 = arith.constant 0 : index
    %c0_93 = arith.constant 0 : index
    %368 = vector.load %arg6[%c1_91, %c0_92, %c0_93] : memref<2x32x32xbf16, #tpu.memory_space<vmem>>, vector<1x32x32xbf16>
    %369 = vector.shape_cast %368 : vector<1x32x32xbf16> to vector<32x32xbf16>
    %cst_94 = arith.constant dense<0.000000e+00> : vector<16x32xf32>
    %370 = tpu.matmul %367, %369, %cst_94 {dimension_numbers = #tpu.dot_dimension_numbers<[1], [0], [0], [1], [0, 0, 1, 1], [], []>} : vector<16x32xbf16>, vector<32x32xbf16>, vector<16x32xf32> -> vector<16x32xf32>
    %371 = arith.addf %217, %370 : vector<16x32xf32>
    %c1_95 = arith.constant 1 : index
    %c0_96 = arith.constant 0 : index
    %c0_97 = arith.constant 0 : index
    %372 = vector.load %arg7[%c1_95, %c0_96, %c0_97] : memref<2x1x32xf32, #tpu.memory_space<vmem>>, vector<1x1x32xf32>
    %373 = vector.shape_cast %372 : vector<1x1x32xf32> to vector<1x32xf32>
    %374 = vector.broadcast %373 : vector<1x32xf32> to vector<16x32xf32>
    %375 = arith.addf %371, %374 : vector<16x32xf32>
    %c1_98 = arith.constant 1 : index
    %c0_99 = arith.constant 0 : index
    %c0_100 = arith.constant 0 : index
    %376 = vector.load %arg8[%c1_98, %c0_99, %c0_100] : memref<2x1x32xf32, #tpu.memory_space<vmem>>, vector<1x1x32xf32>
    %377 = vector.shape_cast %376 : vector<1x1x32xf32> to vector<1x32xf32>
    %c1_101 = arith.constant 1 : index
    %c0_102 = arith.constant 0 : index
    %c0_103 = arith.constant 0 : index
    %378 = vector.load %arg9[%c1_101, %c0_102, %c0_103] : memref<2x1x32xf32, #tpu.memory_space<vmem>>, vector<1x1x32xf32>
    %379 = vector.shape_cast %378 : vector<1x1x32xf32> to vector<1x32xf32>
    %cst_104 = arith.constant dense<0.000000e+00> : vector<16xf32>
    %380 = vector.multi_reduction <add>, %375, %cst_104 [1] : vector<16x32xf32> to vector<16xf32>
    %381 = vector.shape_cast %380 : vector<16xf32> to vector<16x1xf32>
    %cst_105 = arith.constant 3.200000e+01 : f32
    %382 = vector.broadcast %cst_105 : f32 to vector<16x1xf32>
    %383 = arith.divf %381, %382 : vector<16x1xf32>
    %384 = vector.broadcast %383 : vector<16x1xf32> to vector<16x32xf32>
    %385 = arith.subf %375, %384 : vector<16x32xf32>
    %386 = arith.mulf %385, %385 : vector<16x32xf32>
    %cst_106 = arith.constant dense<0.000000e+00> : vector<16xf32>
    %387 = vector.multi_reduction <add>, %386, %cst_106 [1] : vector<16x32xf32> to vector<16xf32>
    %388 = vector.shape_cast %387 : vector<16xf32> to vector<16x1xf32>
    %cst_107 = arith.constant 3.200000e+01 : f32
    %389 = vector.broadcast %cst_107 : f32 to vector<16x1xf32>
    %390 = arith.divf %388, %389 : vector<16x1xf32>
    %391 = vector.broadcast %383 : vector<16x1xf32> to vector<16x32xf32>
    %392 = arith.subf %375, %391 : vector<16x32xf32>
    %cst_108 = arith.constant 9.99999974E-6 : f32
    %393 = vector.broadcast %cst_108 : f32 to vector<16x1xf32>
    %394 = arith.addf %390, %393 : vector<16x1xf32>
    %395 = math.rsqrt %394 : vector<16x1xf32>
    %396 = vector.broadcast %395 : vector<16x1xf32> to vector<16x32xf32>
    %397 = arith.mulf %392, %396 : vector<16x32xf32>
    %398 = vector.broadcast %377 : vector<1x32xf32> to vector<16x32xf32>
    %399 = arith.mulf %397, %398 : vector<16x32xf32>
    %400 = vector.broadcast %379 : vector<1x32xf32> to vector<16x32xf32>
    %401 = arith.addf %399, %400 : vector<16x32xf32>
    %402 = arith.truncf %401 : vector<16x32xf32> to vector<16x32xbf16>
    %c1_109 = arith.constant 1 : index
    %c0_110 = arith.constant 0 : index
    %c0_111 = arith.constant 0 : index
    %403 = vector.load %arg10[%c1_109, %c0_110, %c0_111] : memref<2x32x128xbf16, #tpu.memory_space<vmem>>, vector<1x32x128xbf16>
    %404 = vector.shape_cast %403 : vector<1x32x128xbf16> to vector<32x128xbf16>
    %cst_112 = arith.constant dense<0.000000e+00> : vector<16x128xf32>
    %405 = tpu.matmul %402, %404, %cst_112 {dimension_numbers = #tpu.dot_dimension_numbers<[1], [0], [0], [1], [0, 0, 1, 1], [], []>} : vector<16x32xbf16>, vector<32x128xbf16>, vector<16x128xf32> -> vector<16x128xf32>
    %c1_113 = arith.constant 1 : index
    %c0_114 = arith.constant 0 : index
    %c0_115 = arith.constant 0 : index
    %406 = vector.load %arg11[%c1_113, %c0_114, %c0_115] : memref<2x1x128xf32, #tpu.memory_space<vmem>>, vector<1x1x128xf32>
    %407 = vector.shape_cast %406 : vector<1x1x128xf32> to vector<1x128xf32>
    %408 = vector.broadcast %407 : vector<1x128xf32> to vector<16x128xf32>
    %409 = arith.addf %405, %408 : vector<16x128xf32>
    %cst_116 = arith.constant 5.000000e-01 : f32
    %410 = vector.broadcast %cst_116 : f32 to vector<16x128xf32>
    %411 = arith.mulf %410, %409 : vector<16x128xf32>
    %cst_117 = arith.constant 4.471500e-02 : f32
    %412 = vector.broadcast %cst_117 : f32 to vector<16x128xf32>
    %413 = arith.mulf %412, %409 : vector<16x128xf32>
    %414 = arith.mulf %413, %409 : vector<16x128xf32>
    %415 = arith.mulf %414, %409 : vector<16x128xf32>
    %416 = arith.addf %409, %415 : vector<16x128xf32>
    %cst_118 = arith.constant 0.797884583 : f32
    %417 = vector.broadcast %cst_118 : f32 to vector<16x128xf32>
    %418 = arith.mulf %417, %416 : vector<16x128xf32>
    %419 = math.tanh %418 : vector<16x128xf32>
    %cst_119 = arith.constant 1.000000e+00 : f32
    %420 = vector.broadcast %cst_119 : f32 to vector<16x128xf32>
    %421 = arith.addf %420, %419 : vector<16x128xf32>
    %422 = arith.mulf %411, %421 : vector<16x128xf32>
    %423 = arith.truncf %422 : vector<16x128xf32> to vector<16x128xbf16>
    %c1_120 = arith.constant 1 : index
    %c0_121 = arith.constant 0 : index
    %c0_122 = arith.constant 0 : index
    %424 = vector.load %arg12[%c1_120, %c0_121, %c0_122] : memref<2x128x32xbf16, #tpu.memory_space<vmem>>, vector<1x128x32xbf16>
    %425 = vector.shape_cast %424 : vector<1x128x32xbf16> to vector<128x32xbf16>
    %cst_123 = arith.constant dense<0.000000e+00> : vector<16x32xf32>
    %426 = tpu.matmul %423, %425, %cst_123 {dimension_numbers = #tpu.dot_dimension_numbers<[1], [0], [0], [1], [0, 0, 1, 1], [], []>} : vector<16x128xbf16>, vector<128x32xbf16>, vector<16x32xf32> -> vector<16x32xf32>
    %427 = arith.addf %375, %426 : vector<16x32xf32>
    %c1_124 = arith.constant 1 : index
    %c0_125 = arith.constant 0 : index
    %c0_126 = arith.constant 0 : index
    %428 = vector.load %arg13[%c1_124, %c0_125, %c0_126] : memref<2x1x32xf32, #tpu.memory_space<vmem>>, vector<1x1x32xf32>
    %429 = vector.shape_cast %428 : vector<1x1x32xf32> to vector<1x32xf32>
    %430 = vector.broadcast %429 : vector<1x32xf32> to vector<16x32xf32>
    %431 = arith.addf %427, %430 : vector<16x32xf32>
    %432 = vector.extract_strided_slice %431 {offsets = [7, 0], sizes = [1, 32], strides = [1, 1]} : vector<16x32xf32> to vector<1x32xf32>
    %433 = vector.extract_strided_slice %431 {offsets = [15, 0], sizes = [1, 32], strides = [1, 1]} : vector<16x32xf32> to vector<1x32xf32>
    %434 = tpu.concatenate %432, %433 in 0 : vector<1x32xf32>, vector<1x32xf32> -> vector<2x32xf32>
    %c0_127 = arith.constant 0 : index
    %c0_128 = arith.constant 0 : index
    %435 = vector.load %arg14[%c0_127, %c0_128] : memref<1x32xf32, #tpu.memory_space<vmem>>, vector<1x32xf32>
    %c0_129 = arith.constant 0 : index
    %c0_130 = arith.constant 0 : index
    %436 = vector.load %arg15[%c0_129, %c0_130] : memref<1x32xf32, #tpu.memory_space<vmem>>, vector<1x32xf32>
    %cst_131 = arith.constant dense<0.000000e+00> : vector<2xf32>
    %437 = vector.multi_reduction <add>, %434, %cst_131 [1] : vector<2x32xf32> to vector<2xf32>
    %438 = vector.shape_cast %437 : vector<2xf32> to vector<2x1xf32>
    %cst_132 = arith.constant 3.200000e+01 : f32
    %439 = vector.broadcast %cst_132 : f32 to vector<2x1xf32>
    %440 = arith.divf %438, %439 : vector<2x1xf32>
    %441 = vector.broadcast %440 : vector<2x1xf32> to vector<2x32xf32>
    %442 = arith.subf %434, %441 : vector<2x32xf32>
    %443 = arith.mulf %442, %442 : vector<2x32xf32>
    %cst_133 = arith.constant dense<0.000000e+00> : vector<2xf32>
    %444 = vector.multi_reduction <add>, %443, %cst_133 [1] : vector<2x32xf32> to vector<2xf32>
    %445 = vector.shape_cast %444 : vector<2xf32> to vector<2x1xf32>
    %cst_134 = arith.constant 3.200000e+01 : f32
    %446 = vector.broadcast %cst_134 : f32 to vector<2x1xf32>
    %447 = arith.divf %445, %446 : vector<2x1xf32>
    %448 = vector.broadcast %440 : vector<2x1xf32> to vector<2x32xf32>
    %449 = arith.subf %434, %448 : vector<2x32xf32>
    %cst_135 = arith.constant 9.99999974E-6 : f32
    %450 = vector.broadcast %cst_135 : f32 to vector<2x1xf32>
    %451 = arith.addf %447, %450 : vector<2x1xf32>
    %452 = math.rsqrt %451 : vector<2x1xf32>
    %453 = vector.broadcast %452 : vector<2x1xf32> to vector<2x32xf32>
    %454 = arith.mulf %449, %453 : vector<2x32xf32>
    %455 = vector.broadcast %435 : vector<1x32xf32> to vector<2x32xf32>
    %456 = arith.mulf %454, %455 : vector<2x32xf32>
    %457 = vector.broadcast %436 : vector<1x32xf32> to vector<2x32xf32>
    %458 = arith.addf %456, %457 : vector<2x32xf32>
    %459 = arith.truncf %458 : vector<2x32xf32> to vector<2x32xbf16>
    %c0_136 = arith.constant 0 : index
    %c0_137 = arith.constant 0 : index
    %460 = vector.load %arg16[%c0_136, %c0_137] : memref<32x128xbf16, #tpu.memory_space<vmem>>, vector<32x128xbf16>
    %cst_138 = arith.constant dense<0.000000e+00> : vector<2x128xf32>
    %461 = tpu.matmul %459, %460, %cst_138 {dimension_numbers = #tpu.dot_dimension_numbers<[1], [0], [0], [1], [0, 0, 1, 1], [], []>} : vector<2x32xbf16>, vector<32x128xbf16>, vector<2x128xf32> -> vector<2x128xf32>
    %462 = vector.shape_cast %461 : vector<2x128xf32> to vector<2x1x128xf32>
    %c0_139 = arith.constant 0 : index
    %c0_140 = arith.constant 0 : index
    %c0_141 = arith.constant 0 : index
    %463 = vector.load %arg17[%c0_139, %c0_140, %c0_141] : memref<2x1x128xf32, #tpu.memory_space<vmem>>, vector<2x1x128xf32>
    tpu.vector_store %arg17[%c0_139, %c0_140, %c0_141], %462 {strides = array<i32>} : memref<2x1x128xf32, #tpu.memory_space<vmem>>, vector<2x1x128xf32>,
    return
  }
  func.func @transform_0(%arg0: i32) -> (i32, i32) {
    %c0_i32 = arith.constant 0 : i32
    %c0_i32_0 = arith.constant 0 : i32
    return %arg0, %c0_i32 : i32, i32
  }
  func.func @transform_1(%arg0: i32) -> (i32, i32, i32) {
    %c0_i32 = arith.constant 0 : i32
    %c0_i32_0 = arith.constant 0 : i32
    %c0_i32_1 = arith.constant 0 : i32
    %c0_i32_2 = arith.constant 0 : i32
    return %c0_i32, %c0_i32_0, %c0_i32_1 : i32, i32, i32
  }
  func.func @transform_2(%arg0: i32) -> (i32, i32, i32) {
    %c0_i32 = arith.constant 0 : i32
    %c0_i32_0 = arith.constant 0 : i32
    %c0_i32_1 = arith.constant 0 : i32
    %c0_i32_2 = arith.constant 0 : i32
    return %c0_i32, %c0_i32_0, %c0_i32_1 : i32, i32, i32
  }
  func.func @transform_3(%arg0: i32) -> (i32, i32, i32) {
    %c0_i32 = arith.constant 0 : i32
    %c0_i32_0 = arith.constant 0 : i32
    %c0_i32_1 = arith.constant 0 : i32
    %c0_i32_2 = arith.constant 0 : i32
    return %c0_i32, %c0_i32_0, %c0_i32_1 : i32, i32, i32
  }
  func.func @transform_4(%arg0: i32) -> (i32, i32, i32) {
    %c0_i32 = arith.constant 0 : i32
    %c0_i32_0 = arith.constant 0 : i32
    %c0_i32_1 = arith.constant 0 : i32
    %c0_i32_2 = arith.constant 0 : i32
    return %c0_i32, %c0_i32_0, %c0_i32_1 : i32, i32, i32
  }
  func.func @transform_5(%arg0: i32) -> (i32, i32, i32) {
    %c0_i32 = arith.constant 0 : i32
    %c0_i32_0 = arith.constant 0 : i32
    %c0_i32_1 = arith.constant 0 : i32
    %c0_i32_2 = arith.constant 0 : i32
    return %c0_i32, %c0_i32_0, %c0_i32_1 : i32, i32, i32
  }
  func.func @transform_6(%arg0: i32) -> (i32, i32, i32) {
    %c0_i32 = arith.constant 0 : i32
    %c0_i32_0 = arith.constant 0 : i32
    %c0_i32_1 = arith.constant 0 : i32
    %c0_i32_2 = arith.constant 0 : i32
    return %c0_i32, %c0_i32_0, %c0_i32_1 : i32, i32, i32
  }
  func.func @transform_7(%arg0: i32) -> (i32, i32, i32) {
    %c0_i32 = arith.constant 0 : i32
    %c0_i32_0 = arith.constant 0 : i32
    %c0_i32_1 = arith.constant 0 : i32
    %c0_i32_2 = arith.constant 0 : i32
    return %c0_i32, %c0_i32_0, %c0_i32_1 : i32, i32, i32
  }
  func.func @transform_8(%arg0: i32) -> (i32, i32, i32) {
    %c0_i32 = arith.constant 0 : i32
    %c0_i32_0 = arith.constant 0 : i32
    %c0_i32_1 = arith.constant 0 : i32
    %c0_i32_2 = arith.constant 0 : i32
    return %c0_i32, %c0_i32_0, %c0_i32_1 : i32, i32, i32
  }
  func.func @transform_9(%arg0: i32) -> (i32, i32, i32) {
    %c0_i32 = arith.constant 0 : i32
    %c0_i32_0 = arith.constant 0 : i32
    %c0_i32_1 = arith.constant 0 : i32
    %c0_i32_2 = arith.constant 0 : i32
    return %c0_i32, %c0_i32_0, %c0_i32_1 : i32, i32, i32
  }
  func.func @transform_10(%arg0: i32) -> (i32, i32, i32) {
    %c0_i32 = arith.constant 0 : i32
    %c0_i32_0 = arith.constant 0 : i32
    %c0_i32_1 = arith.constant 0 : i32
    %c0_i32_2 = arith.constant 0 : i32
    return %c0_i32, %c0_i32_0, %c0_i32_1 : i32, i32, i32
  }
  func.func @transform_11(%arg0: i32) -> (i32, i32, i32) {
    %c0_i32 = arith.constant 0 : i32
    %c0_i32_0 = arith.constant 0 : i32
    %c0_i32_1 = arith.constant 0 : i32
    %c0_i32_2 = arith.constant 0 : i32
    return %c0_i32, %c0_i32_0, %c0_i32_1 : i32, i32, i32
  }
  func.func @transform_12(%arg0: i32) -> (i32, i32, i32) {
    %c0_i32 = arith.constant 0 : i32
    %c0_i32_0 = arith.constant 0 : i32
    %c0_i32_1 = arith.constant 0 : i32
    %c0_i32_2 = arith.constant 0 : i32
    return %c0_i32, %c0_i32_0, %c0_i32_1 : i32, i32, i32
  }
  func.func @transform_13(%arg0: i32) -> (i32, i32) {
    %c0_i32 = arith.constant 0 : i32
    %c0_i32_0 = arith.constant 0 : i32
    %c0_i32_1 = arith.constant 0 : i32
    return %c0_i32, %c0_i32_0 : i32, i32
  }
  func.func @transform_14(%arg0: i32) -> (i32, i32) {
    %c0_i32 = arith.constant 0 : i32
    %c0_i32_0 = arith.constant 0 : i32
    %c0_i32_1 = arith.constant 0 : i32
    return %c0_i32, %c0_i32_0 : i32, i32
  }
  func.func @transform_15(%arg0: i32) -> (i32, i32) {
    %c0_i32 = arith.constant 0 : i32
    %c0_i32_0 = arith.constant 0 : i32
    %c0_i32_1 = arith.constant 0 : i32
    return %c0_i32, %c0_i32_0 : i32, i32
  }
  func.func @transform_16(%arg0: i32) -> (i32, i32, i32) {
    %c0_i32 = arith.constant 0 : i32
    %c0_i32_0 = arith.constant 0 : i32
    %c0_i32_1 = arith.constant 0 : i32
    return %arg0, %c0_i32, %c0_i32_0 : i32, i32, i32
  }
}

</mosaic_0001>

<bundles_post_ra>
// kernel: tpu_custom_call.1
= control target key start
LH: loop header
LB: loop body
LE: loop exit
PB: predicated region body
PF: predicated region fallthrough
CT: control target
= control target key end

     0   :  { %s2927_s0 = inlined_call_operand.vmem [shape: f32[16,32], index: 0, kind: input, shape index: {}]   ;;  %s2928_s1 = inlined_call_operand.vmem [shape: f32[2,1,32], index: 1, kind: input, shape index: {}]   ;;  %s2929_s2 = inlined_call_operand.vmem [shape: f32[2,1,32], index: 2, kind: input, shape index: {}]   ;;  %s2930_s3 = inlined_call_operand.vmem [shape: bf16[2,32,96], index: 3, kind: input, shape index: {}]   ;;  %s2931_s4 = inlined_call_operand.vmem [shape: f32[2,1,96], index: 4, kind: input, shape index: {}]   ;;  %s2932_s5 = inlined_call_operand.vmem [shape: bf16[2,32,32], index: 5, kind: input, shape index: {}]   ;;  %s2933_s6 = inlined_call_operand.vmem [shape: f32[2,1,32], index: 6, kind: input, shape index: {}]   ;;  %s2934_s7 = inlined_call_operand.vmem [shape: f32[2,1,32], index: 7, kind: input, shape index: {}]   ;;  %s2935_s8 = inlined_call_operand.vmem [shape: f32[2,1,32], index: 8, kind: input, shape index: {}]   ;;  %s2936_s9 = inlined_call_operand.vmem [shape: bf16[2,32,128], index: 9, kind: input, shape index: {}]   ;;  %s2937_s10 = inlined_call_operand.vmem [shape: f32[2,1,128], index: 10, kind: input, shape index: {}]   ;;  %s2938_s11 = inlined_call_operand.vmem [shape: bf16[2,128,32], index: 11, kind: input, shape index: {}]   ;;  %s2939_s12 = inlined_call_operand.vmem [shape: f32[2,1,32], index: 12, kind: input, shape index: {}]   ;;  %s2940_s13 = inlined_call_operand.vmem [shape: f32[1,32], index: 13, kind: input, shape index: {}]   ;;  %s2941_s14 = inlined_call_operand.vmem [shape: f32[1,32], index: 14, kind: input, shape index: {}]   ;;  %s2942_s15 = inlined_call_operand.vmem [shape: bf16[32,128], index: 15, kind: input, shape index: {}]   ;;  %s2943_s16 = inlined_call_operand.hbm [shape: f32[2,1,128], index: 16, kind: output, shape index: {}]  }
   0x1   :  { %2949 = sst [smem:[#allocation5_spill]] %s2927_s0 }
   0x2   :  { %s2950_s23 = sld [smem:[#allocation5_spill]]  ;;  %vm64_vm0 = vcmask 261120  }
   0x8   :  { %v2400_v0 = vld [vmem:[%s2950_s23] sm:$0xff]  ;;  %v2407_v2 = vld [vmem:[%s2950_s23 + $0x8] sm:$0xff] }
   0x9   :  { %v65_v1 = vsel %vm64_vm0, %v2400_v0, 0.0  ;;  %v68_v3 = vsel %vm64_vm0, %v2407_v2, 0.0 }
   0xa   :  { %66 = vadd.xlane.f32.xlu0 %v65_v1 }
   0xb   :  { %21 = vsyncpa [#allocation3], 0  ;;  %v2301_v4 = vmov 32.0   ;;  %v2095_v21 = vld [vmem:[%s2930_s3 + $0x8] sm:$0xff]  ;;  %v2094_v23 = vld [vmem:[%s2930_s3] sm:$0xff]  ;;  %s2302_s21 = smov 104  }
   0xc   :  { %2183 = vrcp.f32 %v2301_v4  ;;  %156 = vmatpush.bf16.msra.mxu2 %v2095_v21  ;;  %v2165_v42 = vld [vmem:[%s2928_s1] ss:$0 sm:$0xff]  ;;  %s2303_s22 = smov 120   ;;  %s2304_s23 = smov 112   ;;  %vm183_vm8 = vcmask 64512   ;;  %vm334_vm10 = vcmask 1043456  }
   0xd   :  { %v2166_v47 = vld [vmem:[%s2929_s2] ss:$0 sm:$0xff]  ;;  %s2305_s24 = smov 96   ;;  %s2306_s25 = smov 64   ;;  %vm427_vm11 = vcmask 130048   ;;  %vm429_vm12 = vcmask 195584  }
   0xe   :  { %v2167_v52 = vld [vmem:[%s2931_s4] ss:$0 sm:$0xff]  ;;  %s2946_s26 = smov 8   ;;  %s2945_s27 = smov 24  }
   0xf   :  { %s2947_s28 = smov 16   ;;  %s2310_s19 = smov [#allocation2]  }
  0x10   :  { %157 = vmatpush.bf16.msra.mxu2 %v2094_v23 }
  0x12   :  { %69 = vadd.xlane.f32.xlu0 %v68_v3  ;;  %v2184_v5 = vpop.eup %2183 }
  0x13   :  { %v72_v6 = vmul.f32 32.0, %v2184_v5  ;;  %vm76_vm1 = vweird.f32 %v2184_v5 }
  0x15   :  { %v73_v7 = vsub.f32 1.0, %v72_v6 }
  0x17   :  { %v74_v8 = vmul.f32 %v2184_v5, %v73_v7 }
  0x19   :  { %v75_v9 = vadd.f32 %v2184_v5, %v74_v8 }
  0x1b   :  { %v2411_v10 = vsel %vm76_vm1, %v2184_v5, %v75_v9 }
  0x7d   :  { %v67_v11 = vpop.xlane.xlu0 %66 }
  0x7e   :  { %v78_v12 = vmul.f32 %v2411_v10, %v67_v11 }
  0x80   :  { %v80_v13 = vsub.f32 %v2400_v0, %v78_v12 }
  0x82   :  { %v82_v14 = vmul.f32 %v80_v13, %v80_v13 }
  0x84   :  { %v84_v15 = vsel %vm64_vm0, %v82_v14, 0.0 }
  0x85   :  { %85 = vadd.xlane.f32.xlu1 %v84_v15  ;;  %v70_v16 = vpop.xlane.xlu0 %69 }
  0x86   :  { %v79_v17 = vmul.f32 %v2411_v10, %v70_v16 }
  0x88   :  { %v81_v18 = vsub.f32 %v2407_v2, %v79_v17 }
  0x8a   :  { %v83_v19 = vmul.f32 %v81_v18, %v81_v18 }
  0x8c   :  { %v87_v20 = vsel %vm64_vm0, %v83_v19, 0.0  ;;  %v57_v19 = vlaneseq }
  0x8d   :  { %88 = vadd.xlane.f32.xlu1 %v87_v20 }
  0x8e   :  { %v58_v20 = vshrl.u32 %v57_v19, 7  ;;  %v60_v21 = vand.u32 127, %v57_v19 }
  0x90   :  { %vm2462_vm9 = vcmp.le.s32.totalorder %v60_v21, %v58_v20 }
  0xf8   :  { %v86_v22 = vpop.xlane.xlu1 %85 }
  0xf9   :  { %v90_v24 = vmul.f32 %v86_v22, %v2411_v10 }
  0xfb   :  { %v92_v25 = vadd.f32 1e-05, %v90_v24 }
  0xfd   :  { %2185 = vrsqrt.f32 %v92_v25  ;;  %vm100_vm3 = vweird.f32 %v92_v25 }
 0x100   :  { %v89_v26 = vpop.xlane.xlu1 %88 }
 0x101   :  { %v91_v27 = vmul.f32 %v89_v26, %v2411_v10 }
 0x103   :  { %v2186_v28 = vpop.eup %2185  ;;  %v93_v29 = vadd.f32 1e-05, %v91_v27 }
 0x104   :  { %v95_v30 = vmul.f32 %v2186_v28, %v92_v25  ;;  %vm101_vm2 = vweird.f32 %v2186_v28 }
 0x105   :  { %2187 = vrsqrt.f32 %v93_v29  ;;  %vm102_vm4 = vmor %vm100_vm3, %vm101_vm2  ;;  %vm110_vm6 = vweird.f32 %v93_v29 }
 0x106   :  { %v96_v31 = vmul.f32 %v2186_v28, %v95_v30 }
 0x108   :  { %v97_v32 = vmul.f32 0.5, %v96_v31 }
 0x10a   :  { %v98_v33 = vsub.f32 1.5, %v97_v32 }
 0x10b   :  { %v2188_v34 = vpop.eup %2187 }
 0x10c   :  { %v99_v35 = vmul.f32 %v2186_v28, %v98_v33  ;;  %v105_v36 = vmul.f32 %v2188_v34, %v93_v29  ;;  %vm111_vm5 = vweird.f32 %v2188_v34 }
 0x10d   :  { %vm112_vm7 = vmor %vm110_vm6, %vm111_vm5 }
 0x10e   :  { %v106_v37 = vmul.f32 %v2188_v34, %v105_v36  ;;  %v103_v38 = vsel %vm102_vm4, %v2186_v28, %v99_v35 }
 0x10f   :  { %v114_v41 = vmul.f32 %v103_v38, %v80_v13 }
 0x110   :  { %v107_v39 = vmul.f32 0.5, %v106_v37 }
 0x111   :  { %v119_v46 = vmul.f32 %v2165_v42, %v114_v41 }
 0x112   :  { %v108_v40 = vsub.f32 1.5, %v107_v39 }
 0x113   :  { %v124_v49 = vadd.f32 %v2166_v47, %v119_v46 }
 0x114   :  { %v109_v43 = vmul.f32 %v2188_v34, %v108_v40 }
 0x116   :  { %v113_v44 = vsel %vm112_vm7, %v2188_v34, %v109_v43 }
 0x117   :  { %v115_v45 = vmul.f32 %v113_v44, %v81_v18 }
 0x119   :  { %v120_v48 = vmul.f32 %v2165_v42, %v115_v45 }
 0x11b   :  { %v125_v50 = vadd.f32 %v2166_v47, %v120_v48 }
 0x11d   :  { %v126_v51 = vpack.c.bf16 %v125_v50, %v124_v49 }
 0x11f   :  { %1907 = vmatmul.msk.bf16.vlgmr.msra.gmra.mxu2 %vm64_vm0, %v126_v51 }
 0x1a2   :  { %v159_v53 = vpop.f32.mrf.mxu2 }
 0x1a3   :  { %v160_v54 = vadd.f32 %v2167_v52, %v159_v53 }
 0x1a5   :  { %171 = vrot.lane.b32.xlu0 %v160_v54, %s2302_s21  ;;  %165 = vrot.lane.b32.xlu2 %v160_v54, %s2303_s22  ;;  %v174_v5 = vpack.c.bf16 %v160_v54, %v160_v54 }
 0x1a7   :  { %v179_v6 = vunpack.c.l.b16 %v174_v5 }
 0x1a9   :  { %v2446_v7 = vpack.c.b16 %v179_v6, %v179_v6 }
 0x1aa   :  { %v161_v8 = vpop.f32.mrf.mxu2 }
 0x1ab   :  { %v2450_v9 = vadd.f32 %v2167_v52, %v161_v8 }
 0x1ad   :  { %168 = vrot.lane.b32.xlu2 %v160_v54, %s2304_s23  ;;  %v441_v6 = vpack.c.bf16 %v2450_v9, %v2450_v9 }
 0x1af   :  { %v446_v8 = vunpack.c.l.b16 %v441_v6 }
 0x1ff   :  { %v166_v55 = vpop.permute.xlu2 %165 }
 0x200   :  { %v175_v56 = vpack.c.bf16 %v166_v55, %v166_v55 }
 0x202   :  { %v204_v57 = vunpack.c.l.b16 %v175_v56 }
 0x204   :  { %v2440_v58 = vpack.c.b16 %v204_v57, %v204_v57 }
 0x206   :  { %206 = vrot.lane.b32.xlu1 %v2440_v58, %s2305_s24 }
 0x207   :  { %v169_v59 = vpop.permute.xlu2 %168 }
 0x208   :  { %v176_v60 = vpack.c.bf16 %v169_v59, %v169_v59 }
 0x20a   :  { %v228_v61 = vunpack.c.l.b16 %v176_v60 }
 0x20c   :  { %v229_v62 = vpack.c.b16 %v228_v61, %v228_v61 }
 0x20e   :  { %230 = vrot.lane.b32.xlu2 %v229_v62, %s2305_s24 }
 0x217   :  { %v172_v63 = vpop.permute.xlu0 %171 }
 0x218   :  { %v177_v1 = vpack.c.bf16 %v172_v63, %v172_v63 }
 0x21a   :  { %v252_v3 = vunpack.c.l.b16 %v177_v1 }
 0x21c   :  { %v253_v4 = vpack.c.b16 %v252_v3, %v252_v3 }
 0x21e   :  { %254 = vrot.lane.b32.xlu2 %v253_v4, %s2305_s24 }
 0x226   :  { %181 = vrot.lane.b32.xlu2 %v2446_v7, %s2305_s24 }
 0x22e   :  { %435 = vrot.lane.b32.xlu2 %v2450_v9, %s2304_s23 }
 0x268   :  { %v231_v11 = vpop.permute.xlu2 %230 }
 0x269   :  { %v236_v12 = vsel %vm183_vm8, %v231_v11, 0  ;;  %v2509_v11 = vpack.c.b16 %v446_v8, %v446_v8 }
 0x26a   :  { %245 = vmatpush.bf16.xpose.msra.mxu3 %v236_v12 }
 0x271   :  { %1910 = vmatmul.msk.bf16.vlgmr.msra.gmra.mxu3 %vm183_vm8, %v176_v60 }
 0x278   :  { %v207_v13 = vpop.permute.xlu1 %206  ;;  %v255_v14 = vpop.permute.xlu2 %254 }
 0x279   :  { %v212_v15 = vsel %vm183_vm8, %v207_v13, 0  ;;  %v260_v16 = vsel %vm183_vm8, %v255_v14, 0 }
 0x27a   :  { %221 = vmatpush.bf16.xpose.msrb.mxu2 %v212_v15  ;;  %269 = vmatpush.bf16.xpose.msra.mxu0 %v260_v16 }
 0x280   :  { %v182_v17 = vpop.permute.xlu2 %181 }
 0x281   :  { %1909 = vmatmul.msk.bf16.vlgmr.msrb.gmra.mxu2 %vm183_vm8, %v175_v56  ;;  %1911 = vmatmul.msk.bf16.vlgmr.msra.gmra.mxu0 %vm183_vm8, %v177_v1  ;;  %v188_v18 = vsel %vm183_vm8, %v182_v17, 0 }
 0x282   :  { %197 = vmatpush.bf16.xpose.msra.mxu1 %v188_v18 }
 0x288   :  { %v436_v39 = vpop.permute.xlu2 %435 }
 0x289   :  { %1908 = vmatmul.msk.bf16.vlgmr.msra.gmra.mxu1 %vm183_vm8, %v174_v5  ;;  %v2483_v40 = vpack.c.bf16 %v436_v39, %v436_v39 }
 0x28b   :  { %v494_v41 = vunpack.c.l.b16 %v2483_v40 }
 0x28d   :  { %v2488_v42 = vpack.c.b16 %v494_v41, %v494_v41 }
 0x2f4   :  { %v247_v23 = vpop.f32.mrf.mxu3 }
 0x2f5   :  { %v279_v24 = vsel %vm2462_vm9, %v247_v23, -1e+30 }
 0x2f6   :  { %v287_v25 = vsel %vm183_vm8, %v279_v24, -inf }
 0x2f7   :  { %288 = vmax.xlane.f32.xlu2 %v287_v25 }
 0x2fc   :  { %v249_v26 = vpop.f32.mrf.mxu3 }
 0x2fe   :  { %v271_v27 = vpop.f32.mrf.mxu0 }
 0x2ff   :  { %v280_v28 = vsel %vm2462_vm9, %v271_v27, -1e+30 }
 0x300   :  { %v290_v29 = vsel %vm183_vm8, %v280_v28, -inf }
 0x301   :  { %291 = vmax.xlane.f32.xlu1 %v290_v29 }
 0x304   :  { %v223_v30 = vpop.f32.mrf.mxu2 }
 0x305   :  { %v278_v31 = vsel %vm2462_vm9, %v223_v30, -1e+30 }
 0x306   :  { %v199_v32 = vpop.f32.mrf.mxu1  ;;  %v273_v33 = vpop.f32.mrf.mxu0  ;;  %v284_v34 = vsel %vm183_vm8, %v278_v31, -inf }
 0x307   :  { %285 = vmax.xlane.f32.xlu0 %v284_v34  ;;  %v277_v37 = vsel %vm2462_vm9, %v199_v32, -1e+30 }
 0x308   :  { %v281_v38 = vsel %vm183_vm8, %v277_v37, -inf }
 0x30c   :  { %v225_v35 = vpop.f32.mrf.mxu2 }
 0x30e   :  { %v201_v36 = vpop.f32.mrf.mxu1 }
 0x30f   :  { %372 = vrot.lane.b32.xlu2 %v229_v62, %s2306_s25 }
 0x31a   :  { %438 = vrot.lane.b32.xlu1 %v2450_v9, %s2302_s21 }
 0x31b   :  { %432 = vrot.lane.b32.xlu0 %v2450_v9, %s2303_s22 }
 0x345   :  { %282 = vmax.xlane.f32.xlu0 %v281_v38 }
 0x359   :  { %351 = vrot.lane.b32.xlu0 %v2440_v58, %s2306_s25 }
 0x361   :  { %496 = vrot.lane.b32.xlu0 %v2488_v42, %s2305_s24 }
 0x369   :  { %393 = vrot.lane.b32.xlu0 %v253_v4, %s2306_s25 }
 0x36a   :  { %v289_v43 = vpop.xlane.xlu2 %288 }
 0x36b   :  { %v295_v48 = vsub.f32 %v279_v24, %v289_v43 }
 0x36d   :  { %v301_v50 = vmul.f32 1.442695, %v295_v48 }
 0x372   :  { %v373_v44 = vpop.permute.xlu2 %372 }
 0x373   :  { %v378_v45 = vsel %vm334_vm10, %v373_v44, 0 }
 0x374   :  { %v292_v46 = vpop.xlane.xlu1 %291  ;;  %387 = vmatpush.bf16.msrb.mxu3 %v378_v45 }
 0x375   :  { %v296_v47 = vsub.f32 %v280_v28, %v292_v46 }
 0x377   :  { %v303_v49 = vmul.f32 1.442695, %v296_v47 }
 0x379   :  { %2189 = vpow2.f32 %v303_v49 }
 0x37a   :  { %v286_v51 = vpop.xlane.xlu0 %285  ;;  %2191 = vpow2.f32 %v301_v50 }
 0x37b   :  { %v294_v52 = vsub.f32 %v278_v31, %v286_v51 }
 0x37d   :  { %v299_v53 = vmul.f32 1.442695, %v294_v52 }
 0x37f   :  { %v2190_v54 = vpop.eup %2189  ;;  %2193 = vpow2.f32 %v299_v53 }
 0x380   :  { %v314_v55 = vsel %vm183_vm8, %v2190_v54, 0.0  ;;  %v2192_v56 = vpop.eup %2191 }
 0x381   :  { %315 = vadd.xlane.f32.xlu1 %v314_v55  ;;  %v311_v59 = vsel %vm183_vm8, %v2192_v56, 0.0 }
 0x385   :  { %v2194_v57 = vpop.eup %2193 }
 0x386   :  { %v308_v58 = vsel %vm183_vm8, %v2194_v57, 0.0 }
 0x387   :  { %309 = vadd.xlane.f32.xlu2 %v308_v58 }
 0x389   :  { %312 = vadd.xlane.f32.xlu1 %v311_v59 }
 0x38c   :  { %v439_v60 = vpop.permute.xlu1 %438 }
 0x38d   :  { %v444_v61 = vpack.c.bf16 %v439_v60, %v439_v60  ;;  %v433_v62 = vpop.permute.xlu0 %432 }
 0x38e   :  { %v442_v63 = vpack.c.bf16 %v433_v62, %v433_v62 }
 0x38f   :  { %v518_v1 = vunpack.c.l.b16 %v444_v61 }
 0x390   :  { %v470_v3 = vunpack.c.l.b16 %v442_v63 }
 0x391   :  { %v2497_v4 = vpack.c.b16 %v518_v1, %v518_v1 }
 0x392   :  { %v2501_v5 = vpack.c.b16 %v470_v3, %v470_v3 }
 0x39f   :  { %520 = vrot.lane.b32.xlu2 %v2497_v4, %s2305_s24 }
 0x3a2   :  { %472 = vrot.lane.b32.xlu1 %v2501_v5, %s2305_s24 }
 0x3a7   :  { %329 = vrot.lane.b32.xlu2 %v2446_v7, %s2306_s25 }
 0x3aa   :  { %448 = vrot.lane.b32.xlu1 %v2509_v11, %s2305_s24 }
 0x3b8   :  { %v283_v12 = vpop.xlane.xlu0 %282 }
 0x3b9   :  { %v293_v13 = vsub.f32 %v277_v37, %v283_v12 }
 0x3bb   :  { %v297_v14 = vmul.f32 1.442695, %v293_v13 }
 0x3bd   :  { %2195 = vpow2.f32 %v297_v14 }
 0x3c3   :  { %v2196_v15 = vpop.eup %2195 }
 0x3c4   :  { %v305_v16 = vsel %vm183_vm8, %v2196_v15, 0.0 }
 0x3c5   :  { %306 = vadd.xlane.f32.xlu0 %v305_v16 }
 0x3cb   :  { %v352_v9 = vpop.permute.xlu0 %351 }
 0x3cc   :  { %v357_v17 = vsel %vm334_vm10, %v352_v9, 0 }
 0x3cd   :  { %366 = vmatpush.bf16.msra.mxu2 %v357_v17 }
 0x3d3   :  { %v497_v18 = vpop.permute.xlu0 %496 }
 0x3d4   :  { %v502_v7 = vsel %vm183_vm8, %v497_v18, 0 }
 0x3d5   :  { %511 = vmatpush.bf16.xpose.msra.mxu3 %v502_v7 }
 0x3db   :  { %v394_v19 = vpop.permute.xlu0 %393 }
 0x3dc   :  { %v399_v20 = vsel %vm334_vm10, %v394_v19, 0 }
 0x3dd   :  { %408 = vmatpush.bf16.msrb.mxu0 %v399_v20 }
 0x3f4   :  { %v316_v21 = vpop.xlane.xlu1 %315 }
 0x3f5   :  { %2197 = vrcp.f32 %v316_v21 }
 0x3fa   :  { %v310_v23 = vpop.xlane.xlu2 %309 }
 0x3fb   :  { %v2198_v24 = vpop.eup %2197  ;;  %2199 = vrcp.f32 %v310_v23 }
 0x3fc   :  { %v324_v25 = vmul.f32 %v2198_v24, %v2190_v54  ;;  %v313_v26 = vpop.xlane.xlu1 %312 }
 0x3fd   :  { %2201 = vrcp.f32 %v313_v26 }
 0x3fe   :  { %v328_v27 = vpack.c.bf16 %v324_v25, %v324_v25 }
 0x400   :  { %1915 = vmatmul.msk.bf16.vlgmr.msrb.gmra.mxu0 %vm183_vm8, %v328_v27 }
 0x401   :  { %v2200_v28 = vpop.eup %2199 }
 0x402   :  { %v322_v29 = vmul.f32 %v2200_v28, %v2194_v57  ;;  %v521_v30 = vpop.permute.xlu2 %520 }
 0x403   :  { %v2202_v31 = vpop.eup %2201  ;;  %v526_v32 = vsel %vm183_vm8, %v521_v30, 0 }
 0x404   :  { %v326_v33 = vpack.c.bf16 %v322_v29, %v322_v29  ;;  %v323_v34 = vmul.f32 %v2202_v31, %v2192_v56  ;;  %535 = vmatpush.bf16.xpose.msra.mxu0 %v526_v32 }
 0x406   :  { %1913 = vmatmul.msk.bf16.vlgmr.msra.gmra.mxu2 %vm183_vm8, %v326_v33  ;;  %v327_v35 = vpack.c.bf16 %v323_v34, %v323_v34 }
 0x408   :  { %1914 = vmatmul.msk.bf16.vlgmr.msrb.gmra.mxu3 %vm183_vm8, %v327_v35 }
 0x40a   :  { %v330_v36 = vpop.permute.xlu2 %329 }
 0x40b   :  { %v336_v37 = vsel %vm334_vm10, %v330_v36, 0 }
 0x40c   :  { %345 = vmatpush.bf16.msrb.mxu1 %v336_v37 }
 0x410   :  { %1919 = vmatmul.msk.bf16.vlgmr.msra.gmra.mxu0 %vm183_vm8, %v444_v61 }
 0x414   :  { %v473_v38 = vpop.permute.xlu1 %472 }
 0x415   :  { %v478_v39 = vsel %vm183_vm8, %v473_v38, 0 }
 0x416   :  { %487 = vmatpush.bf16.xpose.msrb.mxu2 %v478_v39 }
 0x418   :  { %1918 = vmatmul.msk.bf16.vlgmr.msra.gmra.mxu3 %vm183_vm8, %v2483_v40 }
 0x41c   :  { %v449_v41 = vpop.permute.xlu1 %448 }
 0x41d   :  { %v454_v43 = vsel %vm183_vm8, %v449_v41, 0  ;;  %1917 = vmatmul.msk.bf16.vlgmr.msrb.gmra.mxu2 %vm183_vm8, %v442_v63 }
 0x41e   :  { %463 = vmatpush.bf16.xpose.msra.mxu1 %v454_v43 }
 0x438   :  { %v307_v44 = vpop.xlane.xlu0 %306 }
 0x439   :  { %2203 = vrcp.f32 %v307_v44 }
 0x43f   :  { %v2204_v45 = vpop.eup %2203 }
 0x440   :  { %v321_v46 = vmul.f32 %v2204_v45, %v2196_v15 }
 0x442   :  { %v325_v47 = vpack.c.bf16 %v321_v46, %v321_v46 }
 0x444   :  { %1912 = vmatmul.msk.bf16.vlgmr.msrb.gmra.mxu1 %vm183_vm8, %v325_v47 }
 0x454   :  { %1916 = vmatmul.msk.bf16.vlgmr.msra.gmra.mxu1 %vm183_vm8, %v441_v6 }
 0x47d   :  { %v2530_v48 = vpop.f32.mrf.mxu0 }
 0x485   :  { %v412_v49 = vpop.f32.mrf.mxu0 }
 0x489   :  { %v2532_v50 = vpop.f32.mrf.mxu2 }
 0x48b   :  { %v2534_v40 = vpop.f32.mrf.mxu3 }
 0x48d   :  { %v537_v51 = vpop.f32.mrf.mxu0 }
 0x48e   :  { %v544_v52 = vsel %vm2462_vm9, %v537_v51, -1e+30 }
 0x48f   :  { %v554_v53 = vsel %vm183_vm8, %v544_v52, -inf }
 0x490   :  { %555 = vmax.xlane.f32.xlu0 %v554_v53 }
 0x491   :  { %v370_v54 = vpop.f32.mrf.mxu2 }
 0x493   :  { %v391_v55 = vpop.f32.mrf.mxu3 }
 0x495   :  { %v539_v56 = vpop.f32.mrf.mxu0 }
 0x49b   :  { %v513_v57 = vpop.f32.mrf.mxu3 }
 0x49c   :  { %v543_v58 = vsel %vm2462_vm9, %v513_v57, -1e+30 }
 0x49d   :  { %v551_v59 = vsel %vm183_vm8, %v543_v58, -inf }
 0x49e   :  { %552 = vmax.xlane.f32.xlu1 %v551_v59 }
 0x4a0   :  { %v489_v60 = vpop.f32.mrf.mxu2 }
 0x4a1   :  { %v542_v61 = vsel %vm2462_vm9, %v489_v60, -1e+30 }
 0x4a2   :  { %v548_v62 = vsel %vm183_vm8, %v542_v61, -inf }
 0x4a3   :  { %v515_v63 = vpop.f32.mrf.mxu3  ;;  %549 = vmax.xlane.f32.xlu2 %v548_v62 }
 0x4a8   :  { %v491_v1 = vpop.f32.mrf.mxu2 }
 0x4c1   :  { %v2545_v3 = vpop.f32.mrf.mxu1 }
 0x4c9   :  { %v349_v6 = vpop.f32.mrf.mxu1 }
 0x4d1   :  { %v465_v8 = vpop.f32.mrf.mxu1 }
 0x4d2   :  { %v541_v12 = vsel %vm2462_vm9, %v465_v8, -1e+30 }
 0x4d3   :  { %v545_v13 = vsel %vm183_vm8, %v541_v12, -inf }
 0x4d4   :  { %546 = vmax.xlane.f32.xlu0 %v545_v13 }
 0x4d9   :  { %v467_v14 = vpop.f32.mrf.mxu1 }
 0x503   :  { %v556_v15 = vpop.xlane.xlu0 %555 }
 0x504   :  { %v560_v16 = vsub.f32 %v544_v52, %v556_v15 }
 0x506   :  { %v567_v9 = vmul.f32 1.442695, %v560_v16 }
 0x508   :  { %2205 = vpow2.f32 %v567_v9 }
 0x50e   :  { %v2206_v17 = vpop.eup %2205 }
 0x50f   :  { %v578_v18 = vsel %vm183_vm8, %v2206_v17, 0.0 }
 0x510   :  { %579 = vadd.xlane.f32.xlu0 %v578_v18 }
 0x511   :  { %v553_v7 = vpop.xlane.xlu1 %552 }
 0x512   :  { %v559_v19 = vsub.f32 %v543_v58, %v553_v7 }
 0x514   :  { %v565_v20 = vmul.f32 1.442695, %v559_v19 }
 0x516   :  { %2207 = vpow2.f32 %v565_v20  ;;  %v550_v21 = vpop.xlane.xlu2 %549 }
 0x517   :  { %v558_v23 = vsub.f32 %v542_v61, %v550_v21 }
 0x519   :  { %v563_v24 = vmul.f32 1.442695, %v558_v23 }
 0x51b   :  { %2209 = vpow2.f32 %v563_v24 }
 0x51c   :  { %v2208_v25 = vpop.eup %2207 }
 0x51d   :  { %v575_v26 = vsel %vm183_vm8, %v2208_v25, 0.0 }
 0x51e   :  { %576 = vadd.xlane.f32.xlu1 %v575_v26 }
 0x521   :  { %v2210_v27 = vpop.eup %2209 }
 0x522   :  { %v572_v28 = vsel %vm183_vm8, %v2210_v27, 0.0 }
 0x523   :  { %573 = vadd.xlane.f32.xlu2 %v572_v28  ;;  %v2168_v28 = vld [vmem:[%s2933_s6] ss:$0 sm:$0xff] }
 0x524   :  { %656 = vrot.lane.b32.xlu0 %v2497_v4, %s2306_s25 }
 0x52c   :  { %593 = vrot.lane.b32.xlu0 %v2509_v11, %s2306_s25 }
 0x537   :  { %635 = vrot.lane.b32.xlu1 %v2488_v42, %s2306_s25 }
 0x53b   :  { %614 = vrot.lane.b32.xlu2 %v2501_v5, %s2306_s25 }
 0x547   :  { %v547_v29 = vpop.xlane.xlu0 %546 }
 0x548   :  { %v557_v30 = vsub.f32 %v541_v12, %v547_v29 }
 0x54a   :  { %v561_v31 = vmul.f32 1.442695, %v557_v30 }
 0x54c   :  { %2211 = vpow2.f32 %v561_v31 }
 0x552   :  { %v2212_v32 = vpop.eup %2211 }
 0x553   :  { %v569_v33 = vsel %vm183_vm8, %v2212_v32, 0.0 }
 0x564   :  { %570 = vadd.xlane.f32.xlu2 %v569_v33 }
 0x583   :  { %v580_v34 = vpop.xlane.xlu0 %579 }
 0x584   :  { %2213 = vrcp.f32 %v580_v34 }
 0x58a   :  { %v2214_v4 = vpop.eup %2213 }
 0x58b   :  { %v588_v35 = vmul.f32 %v2214_v4, %v2206_v17 }
 0x58d   :  { %v592_v42 = vpack.c.bf16 %v588_v35, %v588_v35 }
 0x591   :  { %v577_v5 = vpop.xlane.xlu1 %576 }
 0x596   :  { %v657_v36 = vpop.permute.xlu0 %656  ;;  %v574_v11 = vpop.xlane.xlu2 %573 }
 0x597   :  { %v662_v37 = vsel %vm334_vm10, %v657_v36, 0  ;;  %2215 = vrcp.f32 %v574_v11 }
 0x598   :  { %671 = vmatpush.bf16.msrb.mxu0 %v662_v37  ;;  %2217 = vrcp.f32 %v577_v5 }
 0x59b   :  { %1923 = vmatmul.msk.bf16.vlgmr.msrb.gmra.mxu0 %vm183_vm8, %v592_v42 }
 0x59d   :  { %v2216_v38 = vpop.eup %2215 }
 0x59e   :  { %v586_v39 = vmul.f32 %v2216_v38, %v2210_v27  ;;  %v594_v41 = vpop.permute.xlu0 %593  ;;  %v615_v43 = vpop.permute.xlu2 %614 }
 0x59f   :  { %v599_v44 = vsel %vm334_vm10, %v594_v41, 0  ;;  %v620_v45 = vsel %vm334_vm10, %v615_v43, 0  ;;  %v2218_v47 = vpop.eup %2217  ;;  %v2099_v41 = vld [vmem:[%s2936_s9 + $0x8] sm:$0xff] }
 0x5a0   :  { %v590_v46 = vpack.c.bf16 %v586_v39, %v586_v39  ;;  %608 = vmatpush.bf16.msrb.mxu1 %v599_v44  ;;  %629 = vmatpush.bf16.msra.mxu2 %v620_v45  ;;  %v587_v49 = vmul.f32 %v2218_v47, %v2208_v25  ;;  %v2098_v45 = vld [vmem:[%s2936_s9] sm:$0xff] }
 0x5a2   :  { %v591_v53 = vpack.c.bf16 %v587_v49, %v587_v49 }
 0x5a3   :  { %1921 = vmatmul.msk.bf16.vlgmr.msra.gmra.mxu2 %vm183_vm8, %v590_v46 }
 0x5a4   :  { %820 = vmatpush.bf16.msrb.mxu2 %v2099_v41 }
 0x5a8   :  { %821 = vmatpush.bf16.msrb.mxu2 %v2098_v45  ;;  %v2172_v45 = vld [vmem:[%s2939_s12] ss:$0 sm:$0xff] }
 0x5a9   :  { %v636_v51 = vpop.permute.xlu1 %635 }
 0x5aa   :  { %v641_v52 = vsel %vm334_vm10, %v636_v51, 0 }
 0x5ab   :  { %650 = vmatpush.bf16.msrb.mxu3 %v641_v52 }
 0x5ae   :  { %1922 = vmatmul.msk.bf16.vlgmr.msrb.gmra.mxu3 %vm183_vm8, %v591_v53 }
 0x5d7   :  { %v571_v54 = vpop.xlane.xlu2 %570 }
 0x5d8   :  { %2219 = vrcp.f32 %v571_v54 }
 0x5de   :  { %v2220_v55 = vpop.eup %2219 }
 0x5df   :  { %v585_v56 = vmul.f32 %v2220_v55, %v2212_v32 }
 0x5e1   :  { %v589_v57 = vpack.c.bf16 %v585_v56, %v585_v56 }
 0x5e3   :  { %1920 = vmatmul.msk.bf16.vlgmr.msrb.gmra.mxu1 %vm183_vm8, %v589_v57 }
 0x618   :  { %v673_v58 = vpop.f32.mrf.mxu0 }
 0x619   :  { %v2145_v63 = vpack.i.bf16 %v673_v58, %v2530_v48  ;;  %v2096_v48 = vld [vmem:[%s2932_s5] sm:$0xff] }
 0x620   :  { %v675_v59 = vpop.f32.mrf.mxu0 }
 0x626   :  { %v631_v60 = vpop.f32.mrf.mxu2 }
 0x627   :  { %v2135_v61 = vpack.i.bf16 %v631_v60, %v2532_v50  ;;  %v2097_v50 = vld [vmem:[%s2932_s5 + $0x8] sm:$0xff] }
 0x628   :  { %718 = vmatpush.bf16.msra.mxu1 %v2097_v50 }
 0x629   :  { %2136 = vrot.lane.b32.xlu1 %v2135_v61, %s2946_s26 }
 0x62c   :  { %719 = vmatpush.bf16.msra.mxu1 %v2096_v48 }
 0x62e   :  { %v633_v62 = vpop.f32.mrf.mxu2 }
 0x631   :  { %v652_v1 = vpop.f32.mrf.mxu3  ;;  %2146 = vrot.lane.b32.xlu1 %v2145_v63, %s2945_s27 }
 0x632   :  { %v2140_v6 = vpack.i.bf16 %v652_v1, %v2534_v40  ;;  %v2169_v1 = vld [vmem:[%s2934_s7] ss:$0 sm:$0xff] }
 0x634   :  { %2141 = vrot.lane.b32.xlu0 %v2140_v6, %s2947_s28 }
 0x639   :  { %v654_v8 = vpop.f32.mrf.mxu3 }
 0x660   :  { %v610_v12 = vpop.f32.mrf.mxu1 }
 0x668   :  { %v612_v13 = vpop.f32.mrf.mxu1 }
 0x669   :  { %v2170_v13 = vld [vmem:[%s2935_s8] ss:$0 sm:$0xff] }
 0x69b   :  { %v2137_v14 = vpop.permute.xlu1 %2136 }
 0x69c   :  { %v2139_v15 = vunpack.i.h.bf16 %v2137_v14  ;;  %v2138_v16 = vunpack.i.l.bf16 %v2137_v14 }
 0x69e   :  { %v426_v7 = vsel %vm183_vm8, %v2545_v3, %v2138_v16  ;;  %v689_v19 = vsel %vm183_vm8, %v610_v12, %v2139_v15 }
 0x6a3   :  { %v2147_v40 = vpop.permute.xlu1 %2146 }
 0x6a4   :  { %v2149_v20 = vunpack.i.h.bf16 %v2147_v40  ;;  %v2148_v21 = vunpack.i.l.bf16 %v2147_v40 }
 0x6a6   :  { %v2142_v9 = vpop.permute.xlu0 %2141 }
 0x6a7   :  { %v2144_v17 = vunpack.i.h.bf16 %v2142_v9  ;;  %v2143_v18 = vunpack.i.l.bf16 %v2142_v9  ;;  %v2107_v9 = vld [vmem:[%s2938_s11 + $0x38] sm:$0xff] }
 0x6a8   :  { %911 = vmatpush.bf16.msra.mxu3 %v2107_v9 }
 0x6a9   :  { %v428_v23 = vsel %vm427_vm11, %v426_v7, %v2143_v18  ;;  %v690_v24 = vsel %vm427_vm11, %v689_v19, %v2144_v17  ;;  %v2106_v17 = vld [vmem:[%s2938_s11 + $0x30] sm:$0xff]  ;;  %v2105_v18 = vld [vmem:[%s2938_s11 + $0x28] sm:$0xff]  ;;  %v2104_v7 = vld [vmem:[%s2938_s11 + $0x20] sm:$0xff] }
 0x6aa   :  { %v430_v25 = vsel %vm429_vm12, %v428_v23, %v2148_v21  ;;  %v691_v26 = vsel %vm429_vm12, %v690_v24, %v2149_v20  ;;  %v2103_v19 = vld [vmem:[%s2938_s11 + $0x18] sm:$0xff]  ;;  %v2102_v20 = vld [vmem:[%s2938_s11 + $0x10] sm:$0xff]  ;;  %v2101_v21 = vld [vmem:[%s2938_s11 + $0x8] sm:$0xff] }
 0x6ab   :  { %v692_v27 = vpack.c.bf16 %v691_v26, %v430_v25  ;;  %v2100_v23 = vld [vmem:[%s2938_s11] sm:$0xff] }
 0x6ac   :  { %912 = vmatpush.bf16.msra.mxu3 %v2106_v17  ;;  %v2171_v24 = vld [vmem:[%s2937_s10] ss:$0 sm:$0xff] }
 0x6ad   :  { %1932 = vmatmul.msk.bf16.vlgmr.msra.gmra.mxu1 %vm64_vm0, %v692_v27 }
 0x6b0   :  { %913 = vmatpush.bf16.msra.mxu3 %v2105_v18 }
 0x6b4   :  { %914 = vmatpush.bf16.msra.mxu3 %v2104_v7 }
 0x6b8   :  { %915 = vmatpush.bf16.msra.mxu3 %v2103_v19 }
 0x6bc   :  { %916 = vmatpush.bf16.msra.mxu3 %v2102_v20 }
 0x6c0   :  { %917 = vmatpush.bf16.msra.mxu3 %v2101_v21 }
 0x6c4   :  { %918 = vmatpush.bf16.msra.mxu3 %v2100_v23 }
 0x72a   :  { %v721_v3 = vpop.f32.mrf.mxu1 }
 0x72b   :  { %v726_v29 = vadd.f32 %v721_v3, %v2400_v0 }
 0x72d   :  { %v2594_v30 = vadd.f32 %v2168_v28, %v726_v29 }
 0x72f   :  { %v736_v31 = vsel %vm64_vm0, %v2594_v30, 0.0 }
 0x730   :  { %737 = vadd.xlane.f32.xlu0 %v736_v31 }
 0x732   :  { %v723_v32 = vpop.f32.mrf.mxu1 }
 0x733   :  { %v727_v33 = vadd.f32 %v723_v32, %v2407_v2 }
 0x735   :  { %v2599_v34 = vadd.f32 %v2168_v28, %v727_v33 }
 0x737   :  { %v739_v4 = vsel %vm64_vm0, %v2599_v34, 0.0 }
 0x738   :  { %740 = vadd.xlane.f32.xlu1 %v739_v4 }
 0x7a3   :  { %v738_v35 = vpop.xlane.xlu0 %737 }
 0x7a4   :  { %v742_v36 = vmul.f32 %v738_v35, %v2411_v10 }
 0x7a6   :  { %v744_v0 = vsub.f32 %v2594_v30, %v742_v36 }
 0x7a8   :  { %v746_v11 = vmul.f32 %v744_v0, %v744_v0 }
 0x7aa   :  { %v748_v37 = vsel %vm64_vm0, %v746_v11, 0.0 }
 0x7ab   :  { %749 = vadd.xlane.f32.xlu2 %v748_v37  ;;  %v741_v42 = vpop.xlane.xlu1 %740 }
 0x7ac   :  { %v743_v5 = vmul.f32 %v741_v42, %v2411_v10 }
 0x7ae   :  { %v745_v2 = vsub.f32 %v2599_v34, %v743_v5 }
 0x7b0   :  { %v747_v38 = vmul.f32 %v745_v2, %v745_v2 }
 0x7b2   :  { %v751_v39 = vsel %vm64_vm0, %v747_v38, 0.0 }
 0x7b3   :  { %752 = vadd.xlane.f32.xlu2 %v751_v39 }
 0x81e   :  { %v750_v43 = vpop.xlane.xlu2 %749 }
 0x81f   :  { %v754_v44 = vmul.f32 %v750_v43, %v2411_v10 }
 0x821   :  { %v756_v46 = vadd.f32 1e-05, %v754_v44 }
 0x823   :  { %2221 = vrsqrt.f32 %v756_v46  ;;  %vm764_vm14 = vweird.f32 %v756_v46 }
 0x826   :  { %v753_v47 = vpop.xlane.xlu2 %752 }
 0x827   :  { %v755_v49 = vmul.f32 %v753_v47, %v2411_v10 }
 0x829   :  { %v2222_v51 = vpop.eup %2221  ;;  %v757_v52 = vadd.f32 1e-05, %v755_v49 }
 0x82a   :  { %v759_v53 = vmul.f32 %v2222_v51, %v756_v46  ;;  %vm765_vm13 = vweird.f32 %v2222_v51 }
 0x82b   :  { %2223 = vrsqrt.f32 %v757_v52  ;;  %vm766_vm15 = vmor %vm764_vm14, %vm765_vm13  ;;  %vm774_vm2 = vweird.f32 %v757_v52 }
 0x82c   :  { %v760_v54 = vmul.f32 %v2222_v51, %v759_v53 }
 0x82e   :  { %v761_v55 = vmul.f32 0.5, %v760_v54 }
 0x830   :  { %v762_v56 = vsub.f32 1.5, %v761_v55 }
 0x831   :  { %v2224_v57 = vpop.eup %2223 }
 0x832   :  { %v763_v58 = vmul.f32 %v2222_v51, %v762_v56  ;;  %v769_v59 = vmul.f32 %v2224_v57, %v757_v52  ;;  %vm775_vm1 = vweird.f32 %v2224_v57 }
 0x833   :  { %vm776_vm3 = vmor %vm774_vm2, %vm775_vm1  ;;  %vm1808_vm1 = vcmask 1040384   ;;  %vm1812_vm2 = vcmask 254976  }
 0x834   :  { %v770_v60 = vmul.f32 %v2224_v57, %v769_v59  ;;  %v767_v61 = vsel %vm766_vm15, %v2222_v51, %v763_v58 }
 0x835   :  { %v778_v6 = vmul.f32 %v767_v61, %v744_v0 }
 0x836   :  { %v771_v62 = vmul.f32 0.5, %v770_v60 }
 0x837   :  { %v783_v50 = vmul.f32 %v2169_v1, %v778_v6 }
 0x838   :  { %v772_v63 = vsub.f32 1.5, %v771_v62 }
 0x839   :  { %v788_v15 = vadd.f32 %v2170_v13, %v783_v50 }
 0x83a   :  { %v773_v8 = vmul.f32 %v2224_v57, %v772_v63 }
 0x83c   :  { %v777_v12 = vsel %vm776_vm3, %v2224_v57, %v773_v8 }
 0x83d   :  { %v779_v48 = vmul.f32 %v777_v12, %v745_v2  ;;  %v2108_v12 = vld [vmem:[%s2930_s3 + $0x10] sm:$0xff] }
 0x83f   :  { %v784_v14 = vmul.f32 %v2169_v1, %v779_v48  ;;  %v2109_v1 = vld [vmem:[%s2930_s3 + $0x18] sm:$0xff] }
 0x840   :  { %1023 = vmatpush.bf16.msra.mxu0 %v2109_v1 }
 0x841   :  { %v789_v16 = vadd.f32 %v2170_v13, %v784_v14 }
 0x843   :  { %v790_v40 = vpack.c.bf16 %v789_v16, %v788_v15 }
 0x844   :  { %1024 = vmatpush.bf16.msra.mxu0 %v2108_v12 }
 0x845   :  { %1941 = vmatmul.msk.bf16.vlgmr.msrb.gmra.mxu2 %vm64_vm0, %v790_v40 }
 0x8c8   :  { %v823_v25 = vpop.f32.mrf.mxu2 }
 0x8c9   :  { %v824_v26 = vadd.f32 %v2171_v24, %v823_v25  ;;  %v2173_v25 = vld [vmem:[%s2928_s1 + $0x1] ss:$0 sm:$0xff]  ;;  %s2953_s1 = smov 16  }
 0x8cb   :  { %v830_v27 = vmul.f32 0.044715, %v824_v26  ;;  %v828_v2 = vmul.f32 0.5, %v824_v26 }
 0x8cd   :  { %v832_v28 = vmul.f32 %v830_v27, %v824_v26 }
 0x8cf   :  { %v834_v3 = vmul.f32 %v832_v28, %v824_v26 }
 0x8d0   :  { %v825_v29 = vpop.f32.mrf.mxu2 }
 0x8d1   :  { %v836_v31 = vadd.f32 %v834_v3, %v824_v26  ;;  %v826_v32 = vadd.f32 %v2171_v24, %v825_v29  ;;  %v2174_v3 = vld [vmem:[%s2929_s2 + $0x1] ss:$0 sm:$0xff]  ;;  %s2954_s2 = smov 8  }
 0x8d3   :  { %v831_v33 = vmul.f32 0.044715, %v826_v32  ;;  %v838_v4 = vmul.f32 0.7978846, %v836_v31  ;;  %v829_v38 = vmul.f32 0.5, %v826_v32 }
 0x8d5   :  { %v833_v35 = vmul.f32 %v831_v33, %v826_v32  ;;  %2225 = vtanh.f32 %v838_v4 }
 0x8d7   :  { %v835_v36 = vmul.f32 %v833_v35, %v826_v32 }
 0x8d9   :  { %v837_v0 = vadd.f32 %v835_v36, %v826_v32  ;;  %v2175_v36 = vld [vmem:[%s2931_s4 + $0x1] ss:$0 sm:$0xff]  ;;  %s2955_s4 = smov 24  }
 0x8db   :  { %v839_v11 = vmul.f32 0.7978846, %v837_v0  ;;  %v2226_v37 = vpop.eup %2225 }
 0x8dc   :  { %v842_v42 = vadd.f32 1.0, %v2226_v37 }
 0x8dd   :  { %2227 = vtanh.f32 %v839_v11 }
 0x8de   :  { %v844_v41 = vmul.f32 %v842_v42, %v828_v2 }
 0x8e3   :  { %v2228_v5 = vpop.eup %2227 }
 0x8e4   :  { %v843_v39 = vadd.f32 1.0, %v2228_v5 }
 0x8e6   :  { %v845_v43 = vmul.f32 %v843_v39, %v829_v38 }
 0x8e8   :  { %v846_v44 = vpack.c.bf16 %v845_v43, %v844_v41 }
 0x8ea   :  { %919 = vmatmul.bf16.vlgmr.msra.gmra.mxu3 %v846_v44 }
 0x96d   :  { %v920_v46 = vpop.f32.mrf.mxu3 }
 0x96e   :  { %v925_v47 = vadd.f32 %v920_v46, %v2594_v30 }
 0x970   :  { %v2655_v49 = vadd.f32 %v2172_v45, %v925_v47 }
 0x972   :  { %v937_v51 = vsel %vm64_vm0, %v2655_v49, 0.0 }
 0x973   :  { %938 = vadd.xlane.f32.xlu2 %v937_v51 }
 0x975   :  { %v922_v52 = vpop.f32.mrf.mxu3 }
 0x976   :  { %v926_v53 = vadd.f32 %v922_v52, %v2599_v34 }
 0x978   :  { %v2660_v54 = vadd.f32 %v2172_v45, %v926_v53 }
 0x97a   :  { %v940_v55 = vsel %vm64_vm0, %v2660_v54, 0.0 }
 0x97b   :  { %941 = vadd.xlane.f32.xlu0 %v940_v55 }
 0x9e6   :  { %v939_v56 = vpop.xlane.xlu2 %938 }
 0x9e7   :  { %v943_v57 = vmul.f32 %v939_v56, %v2411_v10 }
 0x9e9   :  { %v945_v30 = vsub.f32 %v2655_v49, %v943_v57 }
 0x9eb   :  { %v947_v58 = vmul.f32 %v945_v30, %v945_v30 }
 0x9ed   :  { %v949_v59 = vsel %vm64_vm0, %v947_v58, 0.0 }
 0x9ee   :  { %950 = vadd.xlane.f32.xlu1 %v949_v59  ;;  %v942_v60 = vpop.xlane.xlu0 %941 }
 0x9ef   :  { %v944_v61 = vmul.f32 %v942_v60, %v2411_v10 }
 0x9f1   :  { %v946_v34 = vsub.f32 %v2660_v54, %v944_v61 }
 0x9f3   :  { %v948_v62 = vmul.f32 %v946_v34, %v946_v34 }
 0x9f5   :  { %v952_v63 = vsel %vm64_vm0, %v948_v62, 0.0 }
 0x9f6   :  { %953 = vadd.xlane.f32.xlu2 %v952_v63 }
 0xa61   :  { %v951_v6 = vpop.xlane.xlu1 %950 }
 0xa62   :  { %v955_v8 = vmul.f32 %v951_v6, %v2411_v10 }
 0xa64   :  { %v957_v13 = vadd.f32 1e-05, %v955_v8 }
 0xa66   :  { %2229 = vrsqrt.f32 %v957_v13  ;;  %vm965_vm5 = vweird.f32 %v957_v13 }
 0xa69   :  { %v954_v50 = vpop.xlane.xlu2 %953 }
 0xa6a   :  { %v956_v48 = vmul.f32 %v954_v50, %v2411_v10 }
 0xa6c   :  { %v2230_v14 = vpop.eup %2229  ;;  %v958_v15 = vadd.f32 1e-05, %v956_v48 }
 0xa6d   :  { %v960_v16 = vmul.f32 %v2230_v14, %v957_v13  ;;  %vm966_vm4 = vweird.f32 %v2230_v14 }
 0xa6e   :  { %2231 = vrsqrt.f32 %v958_v15  ;;  %vm967_vm6 = vmor %vm965_vm5, %vm966_vm4  ;;  %vm975_vm13 = vweird.f32 %v958_v15 }
 0xa6f   :  { %v961_v40 = vmul.f32 %v2230_v14, %v960_v16 }
 0xa71   :  { %v962_v9 = vmul.f32 0.5, %v961_v40 }
 0xa73   :  { %v963_v17 = vsub.f32 1.5, %v962_v9 }
 0xa74   :  { %v2232_v18 = vpop.eup %2231 }
 0xa75   :  { %v964_v7 = vmul.f32 %v2230_v14, %v963_v17  ;;  %v970_v19 = vmul.f32 %v2232_v18, %v958_v15  ;;  %vm976_vm7 = vweird.f32 %v2232_v18 }
 0xa76   :  { %vm977_vm14 = vmor %vm975_vm13, %vm976_vm7 }
 0xa77   :  { %v971_v20 = vmul.f32 %v2232_v18, %v970_v19  ;;  %v968_v21 = vsel %vm967_vm6, %v2230_v14, %v964_v7 }
 0xa78   :  { %v979_v26 = vmul.f32 %v968_v21, %v945_v30 }
 0xa79   :  { %v972_v23 = vmul.f32 0.5, %v971_v20 }
 0xa7a   :  { %v984_v29 = vmul.f32 %v2173_v25, %v979_v26 }
 0xa7b   :  { %v973_v24 = vsub.f32 1.5, %v972_v23 }
 0xa7c   :  { %v989_v33 = vadd.f32 %v2174_v3, %v984_v29 }
 0xa7d   :  { %v974_v27 = vmul.f32 %v2232_v18, %v973_v24 }
 0xa7f   :  { %v978_v28 = vsel %vm977_vm14, %v2232_v18, %v974_v27 }
 0xa80   :  { %v980_v31 = vmul.f32 %v978_v28, %v946_v34 }
 0xa82   :  { %v985_v32 = vmul.f32 %v2173_v25, %v980_v31 }
 0xa84   :  { %v990_v4 = vadd.f32 %v2174_v3, %v985_v32 }
 0xa86   :  { %v991_v35 = vpack.c.bf16 %v990_v4, %v989_v33 }
 0xa88   :  { %1989 = vmatmul.msk.bf16.vlgmr.msra.gmra.mxu0 %vm64_vm0, %v991_v35 }
 0xb05   :  { %v1026_v0 = vpop.f32.mrf.mxu0 }
 0xb06   :  { %v1027_v11 = vadd.f32 %v2175_v36, %v1026_v0 }
 0xb08   :  { %1038 = vrot.lane.b32.xlu2 %v1027_v11, %s2302_s21  ;;  %1035 = vrot.lane.b32.xlu1 %v1027_v11, %s2304_s23  ;;  %v1041_v53 = vpack.c.bf16 %v1027_v11, %v1027_v11 }
 0xb09   :  { %1032 = vrot.lane.b32.xlu0 %v1027_v11, %s2303_s22 }
 0xb0a   :  { %v1046_v55 = vunpack.c.l.b16 %v1041_v53 }
 0xb0c   :  { %v1047_v56 = vpack.c.b16 %v1046_v55, %v1046_v55 }
 0xb0d   :  { %v1028_v38 = vpop.f32.mrf.mxu0 }
 0xb0e   :  { %v2695_v39 = vadd.f32 %v2175_v36, %v1028_v38 }
 0xb62   :  { %v1039_v37 = vpop.permute.xlu2 %1038 }
 0xb63   :  { %v1044_v42 = vpack.c.bf16 %v1039_v37, %v1039_v37 }
 0xb65   :  { %v1118_v5 = vunpack.c.l.b16 %v1044_v42 }
 0xb67   :  { %v2691_v2 = vpack.c.b16 %v1118_v5, %v1118_v5 }
 0xb69   :  { %1120 = vrot.lane.b32.xlu1 %v2691_v2, %s2305_s24 }
 0xb71   :  { %1296 = vrot.lane.b32.xlu1 %v2695_v39, %s2304_s23 }
 0xb7a   :  { %v1036_v41 = vpop.permute.xlu1 %1035 }
 0xb7b   :  { %v1043_v43 = vpack.c.bf16 %v1036_v41, %v1036_v41  ;;  %v1033_v44 = vpop.permute.xlu0 %1032 }
 0xb7c   :  { %v1042_v45 = vpack.c.bf16 %v1033_v44, %v1033_v44 }
 0xb7d   :  { %v1094_v46 = vunpack.c.l.b16 %v1043_v43 }
 0xb7e   :  { %v1070_v47 = vunpack.c.l.b16 %v1042_v45 }
 0xb7f   :  { %v1095_v51 = vpack.c.b16 %v1094_v46, %v1094_v46 }
 0xb80   :  { %v1071_v52 = vpack.c.b16 %v1070_v47, %v1070_v47 }
 0xb81   :  { %1096 = vrot.lane.b32.xlu2 %v1095_v51, %s2305_s24 }
 0xb82   :  { %1072 = vrot.lane.b32.xlu0 %v1071_v52, %s2305_s24 }
 0xb89   :  { %1293 = vrot.lane.b32.xlu2 %v2695_v39, %s2303_s22 }
 0xb8a   :  { %1048 = vrot.lane.b32.xlu0 %v1047_v56, %s2305_s24 }
 0xb92   :  { %1299 = vrot.lane.b32.xlu0 %v2695_v39, %s2302_s21 }
 0xbdb   :  { %v1097_v57 = vpop.permute.xlu2 %1096  ;;  %v1121_v60 = vpop.permute.xlu1 %1120 }
 0xbdc   :  { %v1102_v30 = vsel %vm183_vm8, %v1097_v57, 0  ;;  %v1126_v62 = vsel %vm183_vm8, %v1121_v60, 0  ;;  %v1302_v57 = vpack.c.bf16 %v2695_v39, %v2695_v39 }
 0xbdd   :  { %1111 = vmatpush.bf16.xpose.msrb.mxu0 %v1102_v30 }
 0xbde   :  { %v1307_v30 = vunpack.c.l.b16 %v1302_v57 }
 0xbe3   :  { %v1294_v12 = vpop.permute.xlu2 %1293  ;;  %v1297_v4 = vpop.permute.xlu1 %1296 }
 0xbe4   :  { %1992 = vmatmul.msk.bf16.vlgmr.msrb.gmra.mxu0 %vm183_vm8, %v1043_v43  ;;  %v2717_v13 = vpack.c.bf16 %v1294_v12, %v1294_v12  ;;  %v1304_v46 = vpack.c.bf16 %v1297_v4, %v1297_v4 }
 0xbe6   :  { %v1331_v50 = vunpack.c.l.b16 %v2717_v13  ;;  %v1355_v47 = vunpack.c.l.b16 %v1304_v46 }
 0xbe8   :  { %v2720_v48 = vpack.c.b16 %v1331_v50, %v1331_v50 }
 0xbf4   :  { %v1073_v58 = vpop.permute.xlu0 %1072 }
 0xbf5   :  { %v1078_v59 = vsel %vm183_vm8, %v1073_v58, 0  ;;  %v2760_v58 = vpack.c.b16 %v1307_v30, %v1307_v30 }
 0xbf6   :  { %1087 = vmatpush.bf16.xpose.msra.mxu2 %v1078_v59 }
 0xbfc   :  { %v1049_v61 = vpop.permute.xlu0 %1048 }
 0xbfd   :  { %v1054_v34 = vsel %vm183_vm8, %v1049_v61, 0  ;;  %1991 = vmatmul.msk.bf16.vlgmr.msra.gmra.mxu2 %vm183_vm8, %v1042_v45 }
 0xbfe   :  { %1063 = vmatpush.bf16.xpose.msrb.mxu1 %v1054_v34 }
 0xc04   :  { %v1300_v3 = vpop.permute.xlu0 %1299 }
 0xc05   :  { %1990 = vmatmul.msk.bf16.vlgmr.msrb.gmra.mxu1 %vm183_vm8, %v1041_v53  ;;  %v2739_v29 = vpack.c.bf16 %v1300_v3, %v1300_v3 }
 0xc06   :  { %1135 = vmatpush.bf16.xpose.msra.mxu1 %v1126_v62 }
 0xc07   :  { %v1379_v31 = vunpack.c.l.b16 %v2739_v29 }
 0xc09   :  { %v2742_v32 = vpack.c.b16 %v1379_v31, %v1379_v31 }
 0xc15   :  { %1993 = vmatmul.msk.bf16.vlgmr.msra.gmra.mxu1 %vm183_vm8, %v1044_v42 }
 0xc61   :  { %v1113_v63 = vpop.f32.mrf.mxu0 }
 0xc62   :  { %v1143_v1 = vsel %vm2462_vm9, %v1113_v63, -1e+30 }
 0xc63   :  { %v1151_v6 = vsel %vm183_vm8, %v1143_v1, -inf }
 0xc64   :  { %1152 = vmax.xlane.f32.xlu2 %v1151_v6 }
 0xc69   :  { %v1115_v8 = vpop.f32.mrf.mxu0 }
 0xc7c   :  { %1333 = vrot.lane.b32.xlu2 %v2720_v48, %s2305_s24 }
 0xc80   :  { %v1089_v14 = vpop.f32.mrf.mxu2 }
 0xc81   :  { %v1142_v17 = vsel %vm2462_vm9, %v1089_v14, -1e+30 }
 0xc82   :  { %v1065_v15 = vpop.f32.mrf.mxu1  ;;  %v1148_v7 = vsel %vm183_vm8, %v1142_v17, -inf }
 0xc83   :  { %v2726_v16 = vsel %vm2462_vm9, %v1065_v15, -1e+30 }
 0xc84   :  { %v1145_v40 = vsel %vm183_vm8, %v2726_v16, -inf }
 0xc85   :  { %1146 = vmax.xlane.f32.xlu0 %v1145_v40 }
 0xc88   :  { %v1091_v9 = vpop.f32.mrf.mxu2 }
 0xc8a   :  { %v1067_v18 = vpop.f32.mrf.mxu1 }
 0xc8d   :  { %1149 = vmax.xlane.f32.xlu0 %v1148_v7 }
 0xc92   :  { %v1137_v19 = vpop.f32.mrf.mxu1 }
 0xc93   :  { %v1144_v20 = vsel %vm2462_vm9, %v1137_v19, -1e+30 }
 0xc94   :  { %v1154_v21 = vsel %vm183_vm8, %v1144_v20, -inf }
 0xc95   :  { %1155 = vmax.xlane.f32.xlu1 %v1154_v21 }
 0xc9a   :  { %v1139_v23 = vpop.f32.mrf.mxu1 }
 0xca1   :  { %1235 = vrot.lane.b32.xlu0 %v1095_v51, %s2306_s25 }
 0xcae   :  { %1214 = vrot.lane.b32.xlu1 %v1071_v52, %s2306_s25 }
 0xcd7   :  { %v1153_v24 = vpop.xlane.xlu2 %1152 }
 0xcd8   :  { %v1159_v25 = vsub.f32 %v1143_v1, %v1153_v24 }
 0xcda   :  { %v1165_v26 = vmul.f32 1.442695, %v1159_v25 }
 0xcdc   :  { %2233 = vpow2.f32 %v1165_v26 }
 0xcdf   :  { %v1334_v51 = vpop.permute.xlu2 %1333 }
 0xce0   :  { %v1339_v55 = vsel %vm183_vm8, %v1334_v51, 0 }
 0xce2   :  { %v2234_v27 = vpop.eup %2233 }
 0xce3   :  { %v1175_v28 = vsel %vm183_vm8, %v2234_v27, 0.0 }
 0xce4   :  { %1176 = vadd.xlane.f32.xlu0 %v1175_v28 }
 0xcf8   :  { %v1147_v33 = vpop.xlane.xlu0 %1146  ;;  %1381 = vrot.lane.b32.xlu0 %v2742_v32, %s2305_s24 }
 0xcf9   :  { %v1157_v59 = vsub.f32 %v2726_v16, %v1147_v33 }
 0xcfb   :  { %v1161_v60 = vmul.f32 1.442695, %v1157_v59 }
 0xd00   :  { %v1150_v35 = vpop.xlane.xlu0 %1149  ;;  %1193 = vrot.lane.b32.xlu0 %v1047_v56, %s2306_s25  ;;  %v2752_v56 = vpack.c.b16 %v1355_v47, %v1355_v47 }
 0xd01   :  { %v1158_v36 = vsub.f32 %v1142_v17, %v1150_v35 }
 0xd03   :  { %v1163_v0 = vmul.f32 1.442695, %v1158_v36 }
 0xd05   :  { %2235 = vpow2.f32 %v1163_v0 }
 0xd08   :  { %v1156_v11 = vpop.xlane.xlu1 %1155 }
 0xd09   :  { %v1160_v37 = vsub.f32 %v1144_v20, %v1156_v11 }
 0xd0b   :  { %v2236_v42 = vpop.eup %2235  ;;  %v1167_v5 = vmul.f32 1.442695, %v1160_v37 }
 0xd0c   :  { %v1172_v38 = vsel %vm183_vm8, %v2236_v42, 0.0 }
 0xd0d   :  { %2237 = vpow2.f32 %v1167_v5  ;;  %1173 = vadd.xlane.f32.xlu2 %v1172_v38 }
 0xd0e   :  { %2239 = vpow2.f32 %v1161_v60 }
 0xd13   :  { %v2238_v41 = vpop.eup %2237  ;;  %v1236_v43 = vpop.permute.xlu0 %1235 }
 0xd14   :  { %v1241_v44 = vsel %vm334_vm10, %v1236_v43, 0  ;;  %v1178_v45 = vsel %vm183_vm8, %v2238_v41, 0.0  ;;  %v2240_v61 = vpop.eup %2239 }
 0xd15   :  { %1179 = vadd.xlane.f32.xlu1 %v1178_v45  ;;  %1250 = vmatpush.bf16.msra.mxu0 %v1241_v44  ;;  %v1169_v34 = vsel %vm183_vm8, %v2240_v61, 0.0 }
 0xd20   :  { %v1215_v52 = vpop.permute.xlu1 %1214 }
 0xd21   :  { %v1220_v53 = vsel %vm334_vm10, %v1215_v52, 0 }
 0xd22   :  { %1229 = vmatpush.bf16.msrb.mxu3 %v1220_v53 }
 0xd25   :  { %1357 = vrot.lane.b32.xlu2 %v2752_v56, %s2305_s24 }
 0xd26   :  { %1348 = vmatpush.bf16.xpose.msra.mxu3 %v1339_v55 }
 0xd2e   :  { %1256 = vrot.lane.b32.xlu1 %v2691_v2, %s2306_s25 }
 0xd36   :  { %1309 = vrot.lane.b32.xlu1 %v2760_v58, %s2305_s24 }
 0xd4e   :  { %1170 = vadd.xlane.f32.xlu2 %v1169_v34 }
 0xd57   :  { %v1177_v62 = vpop.xlane.xlu0 %1176 }
 0xd58   :  { %2241 = vrcp.f32 %v1177_v62 }
 0xd5e   :  { %v2242_v39 = vpop.eup %2241 }
 0xd5f   :  { %v1187_v63 = vmul.f32 %v2242_v39, %v2234_v27 }
 0xd61   :  { %v1191_v1 = vpack.c.bf16 %v1187_v63, %v1187_v63 }
 0xd63   :  { %1996 = vmatmul.msk.bf16.vlgmr.msra.gmra.mxu0 %vm183_vm8, %v1191_v1 }
 0xd6a   :  { %v1382_v2 = vpop.permute.xlu0 %1381 }
 0xd6b   :  { %v1387_v20 = vsel %vm183_vm8, %v1382_v2, 0 }
 0xd72   :  { %v1194_v6 = vpop.permute.xlu0 %1193 }
 0xd73   :  { %v1199_v8 = vsel %vm334_vm10, %v1194_v6, 0 }
 0xd74   :  { %1208 = vmatpush.bf16.msrb.mxu2 %v1199_v8 }
 0xd80   :  { %v1174_v12 = vpop.xlane.xlu2 %1173 }
 0xd81   :  { %2243 = vrcp.f32 %v1174_v12 }
 0xd87   :  { %v2244_v50 = vpop.eup %2243 }
 0xd88   :  { %v1186_v14 = vmul.f32 %v2244_v50, %v2236_v42  ;;  %v1358_v15 = vpop.permute.xlu2 %1357  ;;  %v1180_v9 = vpop.xlane.xlu1 %1179 }
 0xd89   :  { %v1363_v16 = vsel %vm183_vm8, %v1358_v15, 0  ;;  %2245 = vrcp.f32 %v1180_v9 }
 0xd8a   :  { %v1190_v40 = vpack.c.bf16 %v1186_v14, %v1186_v14  ;;  %1372 = vmatpush.bf16.xpose.msrb.mxu0 %v1363_v16 }
 0xd8c   :  { %1995 = vmatmul.msk.bf16.vlgmr.msrb.gmra.mxu3 %vm183_vm8, %v1190_v40 }
 0xd8f   :  { %v2246_v17 = vpop.eup %2245 }
 0xd90   :  { %v1188_v18 = vmul.f32 %v2246_v17, %v2238_v41 }
 0xd91   :  { %2000 = vmatmul.msk.bf16.vlgmr.msrb.gmra.mxu0 %vm183_vm8, %v1304_v46 }
 0xd92   :  { %v1192_v21 = vpack.c.bf16 %v1188_v18, %v1188_v18 }
 0xd9c   :  { %1999 = vmatmul.msk.bf16.vlgmr.msra.gmra.mxu3 %vm183_vm8, %v2717_v13 }
 0xda0   :  { %v1257_v7 = vpop.permute.xlu1 %1256 }
 0xda1   :  { %v1262_v19 = vsel %vm334_vm10, %v1257_v7, 0 }
 0xda2   :  { %1271 = vmatpush.bf16.msrb.mxu1 %v1262_v19 }
 0xda5   :  { %1997 = vmatmul.msk.bf16.vlgmr.msrb.gmra.mxu1 %vm183_vm8, %v1192_v21 }
 0xda6   :  { %1396 = vmatpush.bf16.xpose.msra.mxu1 %v1387_v20 }
 0xda8   :  { %v1310_v23 = vpop.permute.xlu1 %1309 }
 0xda9   :  { %v1315_v24 = vsel %vm183_vm8, %v1310_v23, 0 }
 0xdaa   :  { %1324 = vmatpush.bf16.xpose.msra.mxu2 %v1315_v24 }
 0xdb5   :  { %2001 = vmatmul.msk.bf16.vlgmr.msra.gmra.mxu1 %vm183_vm8, %v2739_v29 }
 0xdc1   :  { %v1171_v25 = vpop.xlane.xlu2 %1170 }
 0xdc2   :  { %2247 = vrcp.f32 %v1171_v25 }
 0xdc8   :  { %v2248_v13 = vpop.eup %2247 }
 0xdc9   :  { %v1185_v26 = vmul.f32 %v2248_v13, %v2240_v61 }
 0xdcb   :  { %v1189_v27 = vpack.c.bf16 %v1185_v26, %v1185_v26 }
 0xdcd   :  { %1994 = vmatmul.msk.bf16.vlgmr.msrb.gmra.mxu2 %vm183_vm8, %v1189_v27 }
 0xddd   :  { %1998 = vmatmul.msk.bf16.vlgmr.msra.gmra.mxu2 %vm183_vm8, %v1302_v57 }
 0xde0   :  { %v2781_v28 = vpop.f32.mrf.mxu0 }
 0xde8   :  { %v1254_v3 = vpop.f32.mrf.mxu0 }
 0xe0e   :  { %v1374_v31 = vpop.f32.mrf.mxu0 }
 0xe0f   :  { %v1404_v33 = vsel %vm2462_vm9, %v1374_v31, -1e+30  ;;  %v2785_v4 = vpop.f32.mrf.mxu3 }
 0xe10   :  { %v1412_v29 = vsel %vm183_vm8, %v1404_v33, -inf }
 0xe11   :  { %1413 = vmax.xlane.f32.xlu1 %v1412_v29 }
 0xe16   :  { %v1376_v35 = vpop.f32.mrf.mxu0 }
 0xe17   :  { %v1233_v36 = vpop.f32.mrf.mxu3 }
 0xe1f   :  { %v1350_v0 = vpop.f32.mrf.mxu3 }
 0xe20   :  { %v1403_v11 = vsel %vm2462_vm9, %v1350_v0, -1e+30 }
 0xe21   :  { %v1409_v37 = vsel %vm183_vm8, %v1403_v11, -inf }
 0xe22   :  { %v2791_v42 = vpop.f32.mrf.mxu1  ;;  %1410 = vmax.xlane.f32.xlu0 %v1409_v37 }
 0xe27   :  { %v1352_v5 = vpop.f32.mrf.mxu3 }
 0xe2a   :  { %v1275_v38 = vpop.f32.mrf.mxu1 }
 0xe32   :  { %v1398_v41 = vpop.f32.mrf.mxu1 }
 0xe33   :  { %v1405_v43 = vsel %vm2462_vm9, %v1398_v41, -1e+30 }
 0xe34   :  { %v1415_v44 = vsel %vm183_vm8, %v1405_v43, -inf }
 0xe35   :  { %1416 = vmax.xlane.f32.xlu2 %v1415_v44 }
 0xe3a   :  { %v1400_v45 = vpop.f32.mrf.mxu1 }
 0xe50   :  { %v2796_v46 = vpop.f32.mrf.mxu2 }
 0xe58   :  { %v1212_v47 = vpop.f32.mrf.mxu2 }
 0xe60   :  { %v1326_v51 = vpop.f32.mrf.mxu2 }
 0xe61   :  { %v1402_v52 = vsel %vm2462_vm9, %v1326_v51, -1e+30 }
 0xe62   :  { %v1406_v53 = vsel %vm183_vm8, %v1402_v52, -inf }
 0xe63   :  { %1407 = vmax.xlane.f32.xlu2 %v1406_v53 }
 0xe68   :  { %v1328_v55 = vpop.f32.mrf.mxu2 }
 0xe84   :  { %v1414_v57 = vpop.xlane.xlu1 %1413 }
 0xe85   :  { %v1420_v30 = vsub.f32 %v1404_v33, %v1414_v57 }
 0xe87   :  { %v1426_v59 = vmul.f32 1.442695, %v1420_v30 }
 0xe89   :  { %2249 = vpow2.f32 %v1426_v59 }
 0xe8f   :  { %v2250_v60 = vpop.eup %2249 }
 0xe90   :  { %v1436_v61 = vsel %vm183_vm8, %v2250_v60, 0.0 }
 0xe91   :  { %1437 = vadd.xlane.f32.xlu1 %v1436_v61 }
 0xe95   :  { %v1411_v34 = vpop.xlane.xlu0 %1410 }
 0xe96   :  { %v1419_v62 = vsub.f32 %v1403_v11, %v1411_v34 }
 0xe98   :  { %v1424_v39 = vmul.f32 1.442695, %v1419_v62 }
 0xe9a   :  { %2251 = vpow2.f32 %v1424_v39 }
 0xea0   :  { %v2252_v63 = vpop.eup %2251 }
 0xea1   :  { %v1433_v22 = vsel %vm183_vm8, %v2252_v63, 0.0 }
 0xea2   :  { %1434 = vadd.xlane.f32.xlu0 %v1433_v22 }
 0xea8   :  { %v1417_v1 = vpop.xlane.xlu2 %1416 }
 0xea9   :  { %v1421_v2 = vsub.f32 %v1405_v43, %v1417_v1 }
 0xeaa   :  { %1496 = vrot.lane.b32.xlu1 %v2752_v56, %s2306_s25 }
 0xeab   :  { %v1428_v6 = vmul.f32 1.442695, %v1421_v2 }
 0xead   :  { %2253 = vpow2.f32 %v1428_v6 }
 0xeb2   :  { %1454 = vrot.lane.b32.xlu1 %v2760_v58, %s2306_s25 }
 0xeb3   :  { %v2254_v8 = vpop.eup %2253 }
 0xeb4   :  { %v1439_v12 = vsel %vm183_vm8, %v2254_v8, 0.0 }
 0xeb5   :  { %1440 = vadd.xlane.f32.xlu2 %v1439_v12 }
 0xeb6   :  { %1475 = vrot.lane.b32.xlu0 %v2720_v48, %s2306_s25 }
 0xecd   :  { %1517 = vrot.lane.b32.xlu2 %v2742_v32, %s2306_s25 }
 0xed6   :  { %v1408_v50 = vpop.xlane.xlu2 %1407 }
 0xed7   :  { %v1418_v14 = vsub.f32 %v1402_v52, %v1408_v50 }
 0xed9   :  { %v1422_v15 = vmul.f32 1.442695, %v1418_v14 }
 0xedb   :  { %2255 = vpow2.f32 %v1422_v15 }
 0xee1   :  { %v2256_v56 = vpop.eup %2255 }
 0xee2   :  { %v1430_v16 = vsel %vm183_vm8, %v2256_v56, 0.0 }
 0xee3   :  { %1431 = vadd.xlane.f32.xlu0 %v1430_v16 }
 0xf04   :  { %v1438_v40 = vpop.xlane.xlu1 %1437 }
 0xf05   :  { %2257 = vrcp.f32 %v1438_v40 }
 0xf0b   :  { %v2258_v58 = vpop.eup %2257 }
 0xf0c   :  { %v1448_v9 = vmul.f32 %v2258_v58, %v2250_v60 }
 0xf0e   :  { %v1452_v48 = vpack.c.bf16 %v1448_v9, %v1448_v9 }
 0xf15   :  { %v1435_v17 = vpop.xlane.xlu0 %1434 }
 0xf16   :  { %2259 = vrcp.f32 %v1435_v17 }
 0xf1c   :  { %v1497_v18 = vpop.permute.xlu1 %1496  ;;  %v2260_v32 = vpop.eup %2259 }
 0xf1d   :  { %v1502_v7 = vsel %vm334_vm10, %v1497_v18, 0  ;;  %v1447_v21 = vmul.f32 %v2260_v32, %v2252_v63 }
 0xf1e   :  { %1511 = vmatpush.bf16.msra.mxu0 %v1502_v7 }
 0xf1f   :  { %v1451_v13 = vpack.c.bf16 %v1447_v21, %v1447_v21 }
 0xf21   :  { %2004 = vmatmul.msk.bf16.vlgmr.msra.gmra.mxu0 %vm183_vm8, %v1452_v48 }
 0xf24   :  { %v1455_v19 = vpop.permute.xlu1 %1454 }
 0xf25   :  { %v1460_v20 = vsel %vm334_vm10, %v1455_v19, 0 }
 0xf26   :  { %1469 = vmatpush.bf16.msrb.mxu2 %v1460_v20  ;;  %v2113_v20 = vld [vmem:[%s2936_s9 + $0x18] sm:$0xff] }
 0xf28   :  { %v1441_v23 = vpop.xlane.xlu2 %1440  ;;  %v1476_v24 = vpop.permute.xlu0 %1475 }
 0xf29   :  { %2261 = vrcp.f32 %v1441_v23  ;;  %v1481_v25 = vsel %vm334_vm10, %v1476_v24, 0  ;;  %v2112_v24 = vld [vmem:[%s2936_s9 + $0x10] sm:$0xff] }
 0xf2a   :  { %1490 = vmatpush.bf16.msrb.mxu3 %v1481_v25 }
 0xf2d   :  { %2003 = vmatmul.msk.bf16.vlgmr.msrb.gmra.mxu3 %vm183_vm8, %v1451_v13 }
 0xf2e   :  { %1687 = vmatpush.bf16.msra.mxu3 %v2113_v20 }
 0xf2f   :  { %v2262_v26 = vpop.eup %2261 }
 0xf30   :  { %v1449_v27 = vmul.f32 %v2262_v26, %v2254_v8  ;;  %v1518_v3 = vpop.permute.xlu2 %1517 }
 0xf31   :  { %v1523_v31 = vsel %vm334_vm10, %v1518_v3, 0 }
 0xf32   :  { %v1453_v33 = vpack.c.bf16 %v1449_v27, %v1449_v27  ;;  %1532 = vmatpush.bf16.msrb.mxu1 %v1523_v31  ;;  %1688 = vmatpush.bf16.msra.mxu3 %v2112_v24 }
 0xf35   :  { %2005 = vmatmul.msk.bf16.vlgmr.msrb.gmra.mxu1 %vm183_vm8, %v1453_v33 }
 0xf56   :  { %v1432_v29 = vpop.xlane.xlu0 %1431 }
 0xf57   :  { %2263 = vrcp.f32 %v1432_v29 }
 0xf5d   :  { %v2264_v35 = vpop.eup %2263 }
 0xf5e   :  { %v1446_v36 = vmul.f32 %v2264_v35, %v2256_v56 }
 0xf60   :  { %v1450_v0 = vpack.c.bf16 %v1446_v36, %v1446_v36 }
 0xf62   :  { %2002 = vmatmul.msk.bf16.vlgmr.msrb.gmra.mxu2 %vm183_vm8, %v1450_v0 }
 0xf9e   :  { %v1513_v11 = vpop.f32.mrf.mxu0 }
 0xf9f   :  { %v2150_v37 = vpack.i.bf16 %v1513_v11, %v2781_v28  ;;  %v2111_v28 = vld [vmem:[%s2932_s5 + $0x18] sm:$0xff] }
 0xfa0   :  { %1580 = vmatpush.bf16.msra.mxu2 %v2111_v28 }
 0xfa1   :  { %2151 = vrot.lane.b32.xlu1 %v2150_v37, %s2953_s1 }
 0xfa6   :  { %v1515_v5 = vpop.f32.mrf.mxu0 }
 0xfb0   :  { %v1492_v38 = vpop.f32.mrf.mxu3 }
 0xfb1   :  { %v2155_v41 = vpack.i.bf16 %v1492_v38, %v2785_v4  ;;  %v2110_v4 = vld [vmem:[%s2932_s5 + $0x10] sm:$0xff] }
 0xfb2   :  { %v1534_v43 = vpop.f32.mrf.mxu1  ;;  %1581 = vmatpush.bf16.msra.mxu2 %v2110_v4 }
 0xfb3   :  { %2156 = vrot.lane.b32.xlu2 %v2155_v41, %s2954_s2  ;;  %v2160_v45 = vpack.i.bf16 %v1534_v43, %v2791_v42  ;;  %v2177_v43 = vld [vmem:[%s2934_s7 + $0x1] ss:$0 sm:$0xff]  ;;  %s1885_s7 = sshll.u32 %s2310_s19, 4  ;;  %s1886_s7 = int_to_ptr.vmem [resolvable:$true] %s1885_s7 }
 0xfb8   :  { %v1494_v44 = vpop.f32.mrf.mxu3 }
 0xfba   :  { %v1536_v47 = vpop.f32.mrf.mxu1 }
 0xfbb   :  { %2161 = vrot.lane.b32.xlu2 %v2160_v45, %s2955_s4 }
 0xfe5   :  { %v1471_v51 = vpop.f32.mrf.mxu2 }
 0xfed   :  { %v1473_v52 = vpop.f32.mrf.mxu2 }
0x100d   :  { %v2157_v53 = vpop.permute.xlu2 %2156 }
0x100e   :  { %v2159_v55 = vunpack.i.h.bf16 %v2157_v53  ;;  %v2158_v57 = vunpack.i.l.bf16 %v2157_v53 }
0x1010   :  { %v1289_v60 = vsel %vm183_vm8, %v2796_v46, %v2158_v57  ;;  %v1550_v61 = vsel %vm183_vm8, %v1471_v51, %v2159_v55  ;;  %v2176_v46 = vld [vmem:[%s2933_s6 + $0x1] ss:$0 sm:$0xff] }
0x1011   :  { %v2178_v51 = vld [vmem:[%s2935_s8 + $0x1] ss:$0 sm:$0xff]  ;;  %s1887_s8 = sshll.u32 %s2943_s16, 4  ;;  %s1888_s8 = int_to_ptr.hbm [resolvable:$true] %s1887_s8 }
0x1013   :  { %v2152_v30 = vpop.permute.xlu1 %2151 }
0x1014   :  { %v2154_v42 = vunpack.i.h.bf16 %v2152_v30  ;;  %v2153_v59 = vunpack.i.l.bf16 %v2152_v30  ;;  %v2121_v30 = vld [vmem:[%s2938_s11 + $0x78] sm:$0xff] }
0x1015   :  { %v2162_v34 = vpop.permute.xlu2 %2161  ;;  %1779 = vmatpush.bf16.msrb.mxu0 %v2121_v30 }
0x1016   :  { %v1290_v62 = vsel %vm427_vm11, %v1289_v60, %v2153_v59  ;;  %v1551_v39 = vsel %vm427_vm11, %v1550_v61, %v2154_v42  ;;  %v2164_v63 = vunpack.i.h.bf16 %v2162_v34  ;;  %v2163_v22 = vunpack.i.l.bf16 %v2162_v34  ;;  %v2120_v42 = vld [vmem:[%s2938_s11 + $0x70] sm:$0xff]  ;;  %v2119_v59 = vld [vmem:[%s2938_s11 + $0x68] sm:$0xff]  ;;  %v2118_v60 = vld [vmem:[%s2938_s11 + $0x60] sm:$0xff] }
0x1017   :  { %v2117_v61 = vld [vmem:[%s2938_s11 + $0x58] sm:$0xff]  ;;  %v2116_v34 = vld [vmem:[%s2938_s11 + $0x50] sm:$0xff] }
0x1018   :  { %v1291_v1 = vsel %vm429_vm12, %v1290_v62, %v2163_v22  ;;  %v1552_v2 = vsel %vm429_vm12, %v1551_v39, %v2164_v63  ;;  %v2115_v62 = vld [vmem:[%s2938_s11 + $0x48] sm:$0xff]  ;;  %v2114_v39 = vld [vmem:[%s2938_s11 + $0x40] sm:$0xff] }
0x1019   :  { %v1553_v6 = vpack.c.bf16 %v1552_v2, %v1291_v1  ;;  %1780 = vmatpush.bf16.msrb.mxu0 %v2120_v42  ;;  %v2179_v63 = vld [vmem:[%s2937_s10 + $0x1] ss:$0 sm:$0xff] }
0x101b   :  { %2018 = vmatmul.msk.bf16.vlgmr.msra.gmra.mxu2 %vm64_vm0, %v1553_v6 }
0x101d   :  { %1781 = vmatpush.bf16.msrb.mxu0 %v2119_v59 }
0x1021   :  { %1782 = vmatpush.bf16.msrb.mxu0 %v2118_v60 }
0x1025   :  { %1783 = vmatpush.bf16.msrb.mxu0 %v2117_v61 }
0x1029   :  { %1784 = vmatpush.bf16.msrb.mxu0 %v2116_v34 }
0x102d   :  { %1785 = vmatpush.bf16.msrb.mxu0 %v2115_v62 }
0x1031   :  { %1786 = vmatpush.bf16.msrb.mxu0 %v2114_v39 }
0x109e   :  { %v1583_v8 = vpop.f32.mrf.mxu2 }
0x109f   :  { %v1588_v12 = vadd.f32 %v1583_v8, %v2655_v49 }
0x10a1   :  { %v2845_v50 = vadd.f32 %v2176_v46, %v1588_v12 }
0x10a3   :  { %v1601_v14 = vsel %vm64_vm0, %v2845_v50, 0.0 }
0x10a4   :  { %1602 = vadd.xlane.f32.xlu1 %v1601_v14 }
0x10a6   :  { %v1585_v15 = vpop.f32.mrf.mxu2 }
0x10a7   :  { %v1589_v56 = vadd.f32 %v1585_v15, %v2660_v54 }
0x10a9   :  { %v2850_v16 = vadd.f32 %v2176_v46, %v1589_v56 }
0x10ab   :  { %v1604_v40 = vsel %vm64_vm0, %v2850_v16, 0.0 }
0x10ac   :  { %1605 = vadd.xlane.f32.xlu2 %v1604_v40 }
0x1117   :  { %v1603_v58 = vpop.xlane.xlu1 %1602 }
0x1118   :  { %v1607_v9 = vmul.f32 %v1603_v58, %v2411_v10 }
0x111a   :  { %v1609_v49 = vsub.f32 %v2845_v50, %v1607_v9 }
0x111c   :  { %v1611_v17 = vmul.f32 %v1609_v49, %v1609_v49 }
0x111e   :  { %v1613_v18 = vsel %vm64_vm0, %v1611_v17, 0.0 }
0x111f   :  { %1614 = vadd.xlane.f32.xlu0 %v1613_v18  ;;  %v1606_v7 = vpop.xlane.xlu2 %1605 }
0x1120   :  { %v1608_v48 = vmul.f32 %v1606_v7, %v2411_v10 }
0x1122   :  { %v1610_v54 = vsub.f32 %v2850_v16, %v1608_v48 }
0x1124   :  { %v1612_v32 = vmul.f32 %v1610_v54, %v1610_v54 }
0x1126   :  { %v1616_v19 = vsel %vm64_vm0, %v1612_v32, 0.0 }
0x1127   :  { %1617 = vadd.xlane.f32.xlu0 %v1616_v19 }
0x1192   :  { %v1615_v21 = vpop.xlane.xlu0 %1614 }
0x1193   :  { %v1619_v23 = vmul.f32 %v1615_v21, %v2411_v10 }
0x1195   :  { %v1621_v25 = vadd.f32 1e-05, %v1619_v23 }
0x1197   :  { %2265 = vrsqrt.f32 %v1621_v25  ;;  %vm1629_vm9 = vweird.f32 %v1621_v25 }
0x119a   :  { %v1618_v13 = vpop.xlane.xlu0 %1617 }
0x119b   :  { %v1620_v26 = vmul.f32 %v1618_v13, %v2411_v10 }
0x119d   :  { %v2266_v27 = vpop.eup %2265  ;;  %v1622_v3 = vadd.f32 1e-05, %v1620_v26 }
0x119e   :  { %v1624_v31 = vmul.f32 %v2266_v27, %v1621_v25  ;;  %vm1630_vm8 = vweird.f32 %v2266_v27  ;;  %v2180_v25 = vld [vmem:[%s2939_s12 + $0x1] ss:$0 sm:$0xff] }
0x119f   :  { %2267 = vrsqrt.f32 %v1622_v3  ;;  %vm1631_vm10 = vmor %vm1629_vm9, %vm1630_vm8  ;;  %vm1639_vm12 = vweird.f32 %v1622_v3 }
0x11a0   :  { %v1625_v33 = vmul.f32 %v2266_v27, %v1624_v31 }
0x11a2   :  { %v1626_v29 = vmul.f32 0.5, %v1625_v33 }
0x11a4   :  { %v1627_v35 = vsub.f32 1.5, %v1626_v29 }
0x11a5   :  { %v2268_v36 = vpop.eup %2267 }
0x11a6   :  { %v1628_v0 = vmul.f32 %v2266_v27, %v1627_v35  ;;  %v1634_v11 = vmul.f32 %v2268_v36, %v1622_v3  ;;  %vm1640_vm11 = vweird.f32 %v2268_v36 }
0x11a7   :  { %vm1641_vm15 = vmor %vm1639_vm12, %vm1640_vm11 }
0x11a8   :  { %v1635_v37 = vmul.f32 %v2268_v36, %v1634_v11  ;;  %v1632_v5 = vsel %vm1631_vm10, %v2266_v27, %v1628_v0 }
0x11a9   :  { %v1643_v44 = vmul.f32 %v1632_v5, %v1609_v49  ;;  %v2123_v5 = vld [vmem:[%s2942_s15 + $0x8] sm:$0xff] }
0x11aa   :  { %v1636_v38 = vmul.f32 0.5, %v1635_v37  ;;  %1869 = vmatpush.bf16.msra.mxu1 %v2123_v5 }
0x11ab   :  { %v1648_v52 = vmul.f32 %v2177_v43, %v1643_v44 }
0x11ac   :  { %v1637_v41 = vsub.f32 1.5, %v1636_v38 }
0x11ad   :  { %v1653_v53 = vadd.f32 %v2178_v51, %v1648_v52 }
0x11ae   :  { %v1638_v45 = vmul.f32 %v2268_v36, %v1637_v41 }
0x11b0   :  { %v1642_v47 = vsel %vm1641_vm15, %v2268_v36, %v1638_v45 }
0x11b1   :  { %v1644_v28 = vmul.f32 %v1642_v47, %v1610_v54 }
0x11b3   :  { %v1649_v4 = vmul.f32 %v2177_v43, %v1644_v28 }
0x11b5   :  { %v1654_v55 = vadd.f32 %v2178_v51, %v1649_v4  ;;  %v2181_v4 = vld [vmem:[%s2940_s13] ss:$0 sm:$0xff]  ;;  %s2311_s13 = smov 1  }
0x11b7   :  { %v1655_v57 = vpack.c.bf16 %v1654_v55, %v1653_v53 }
0x11b9   :  { %2035 = vmatmul.msk.bf16.vlgmr.msra.gmra.mxu3 %vm64_vm0, %v1655_v57 }
0x123c   :  { %v1690_v22 = vpop.f32.mrf.mxu3 }
0x123d   :  { %v1691_v1 = vadd.f32 %v2179_v63, %v1690_v22 }
0x123f   :  { %v1697_v2 = vmul.f32 0.044715, %v1691_v1  ;;  %v1695_v48 = vmul.f32 0.5, %v1691_v1 }
0x1241   :  { %v1699_v6 = vmul.f32 %v1697_v2, %v1691_v1 }
0x1243   :  { %v1701_v46 = vmul.f32 %v1699_v6, %v1691_v1 }
0x1244   :  { %v1692_v8 = vpop.f32.mrf.mxu3 }
0x1245   :  { %v1703_v12 = vadd.f32 %v1701_v46, %v1691_v1  ;;  %v1693_v14 = vadd.f32 %v2179_v63, %v1692_v8 }
0x1247   :  { %v1698_v15 = vmul.f32 0.044715, %v1693_v14  ;;  %v1705_v56 = vmul.f32 0.7978846, %v1703_v12  ;;  %v1696_v54 = vmul.f32 0.5, %v1693_v14 }
0x1249   :  { %v1700_v40 = vmul.f32 %v1698_v15, %v1693_v14  ;;  %2269 = vtanh.f32 %v1705_v56 }
0x124b   :  { %v1702_v58 = vmul.f32 %v1700_v40, %v1693_v14 }
0x124d   :  { %v1704_v9 = vadd.f32 %v1702_v58, %v1693_v14 }
0x124f   :  { %v1706_v49 = vmul.f32 0.7978846, %v1704_v9  ;;  %v2270_v17 = vpop.eup %2269 }
0x1250   :  { %v1709_v18 = vadd.f32 1.0, %v2270_v17 }
0x1251   :  { %2271 = vtanh.f32 %v1706_v49 }
0x1252   :  { %v1711_v19 = vmul.f32 %v1709_v18, %v1695_v48 }
0x1257   :  { %v2272_v7 = vpop.eup %2271 }
0x1258   :  { %v1710_v32 = vadd.f32 1.0, %v2272_v7 }
0x125a   :  { %v1712_v20 = vmul.f32 %v1710_v32, %v1696_v54 }
0x125c   :  { %v1713_v21 = vpack.c.bf16 %v1712_v20, %v1711_v19 }
0x125e   :  { %1787 = vmatmul.bf16.vlgmr.msrb.gmra.mxu0 %v1713_v21 }
0x12db   :  { %v1788_v23 = vpop.f32.mrf.mxu0 }
0x12dc   :  { %v1793_v24 = vadd.f32 %v1788_v23, %v2845_v50 }
0x12de   :  { %v1800_v26 = vadd.f32 %v2180_v25, %v1793_v24 }
0x12e0   :  { %v1803_v31 = vrot.slane %v1800_v26, 7 }
0x12e3   :  { %v1790_v13 = vpop.f32.mrf.mxu0 }
0x12e4   :  { %v1794_v27 = vadd.f32 %v1790_v13, %v2850_v16  ;;  %v2122_v16 = vld [vmem:[%s2942_s15] sm:$0xff] }
0x12e5   :  { %1870 = vmatpush.bf16.msra.mxu1 %v2122_v16 }
0x12e6   :  { %v1801_v3 = vadd.f32 %v2180_v25, %v1794_v27 }
0x12e8   :  { %v1806_v33 = vrot.slane %v1801_v3, 6 }
0x12ea   :  { %v1809_v29 = vsel %vm1808_vm1, %v1803_v31, %v1806_v33 }
0x12eb   :  { %v1813_v35 = vsel %vm1812_vm2, %v1809_v29, 0.0 }
0x12ec   :  { %1814 = vadd.xlane.f32.xlu0 %v1813_v35 }
0x135f   :  { %v1815_v36 = vpop.xlane.xlu0 %1814 }
0x1360   :  { %v1816_v0 = vmul.f32 %v1815_v36, %v2411_v10 }
0x1362   :  { %v1817_v50 = vsub.f32 %v1809_v29, %v1816_v0 }
0x1364   :  { %v1818_v11 = vmul.f32 %v1817_v50, %v1817_v50 }
0x1366   :  { %v1819_v37 = vsel %vm1812_vm2, %v1818_v11, 0.0 }
0x1367   :  { %1820 = vadd.xlane.f32.xlu0 %v1819_v37 }
0x13da   :  { %v1821_v38 = vpop.xlane.xlu0 %1820 }
0x13db   :  { %v1822_v41 = vmul.f32 %v1821_v38, %v2411_v10  ;;  %v2182_v10 = vld [vmem:[%s2941_s14] ss:$0 sm:$0xff] }
0x13dd   :  { %v1823_v43 = vadd.f32 1e-05, %v1822_v41 }
0x13df   :  { %2273 = vrsqrt.f32 %v1823_v43  ;;  %vm1830_vm4 = vweird.f32 %v1823_v43 }
0x13e5   :  { %v2274_v44 = vpop.eup %2273 }
0x13e6   :  { %v1825_v45 = vmul.f32 %v2274_v44, %v1823_v43  ;;  %vm1831_vm3 = vweird.f32 %v2274_v44 }
0x13e7   :  { %vm1832_vm5 = vmor %vm1830_vm4, %vm1831_vm3 }
0x13e8   :  { %v1826_v47 = vmul.f32 %v2274_v44, %v1825_v45 }
0x13ea   :  { %v1827_v51 = vmul.f32 0.5, %v1826_v47 }
0x13ec   :  { %v1828_v52 = vsub.f32 1.5, %v1827_v51 }
0x13ee   :  { %v1829_v28 = vmul.f32 %v2274_v44, %v1828_v52 }
0x13f0   :  { %v1833_v53 = vsel %vm1832_vm5, %v2274_v44, %v1829_v28 }
0x13f1   :  { %v1834_v55 = vmul.f32 %v1833_v53, %v1817_v50 }
0x13f3   :  { %v1838_v57 = vmul.f32 %v2181_v4, %v1834_v55 }
0x13f5   :  { %v1842_v30 = vadd.f32 %v2182_v10, %v1838_v57 }
0x13f7   :  { %v1843_v42 = vpack.c.bf16 %v1842_v30, %v1842_v30 }
0x13f9   :  { %2093 = vmatmul.msk.bf16.vlgmr.msra.gmra.mxu1 %vm64_vm0, %v1843_v42 }
0x1476   :  { %v1872_v59 = vpop.f32.mrf.mxu1 }
0x1477   :  { %v1877_v60 = vrot.slane %v1872_v59, 1  ;;  %1879 = vst [vmem:[#allocation2] sm:$0x1] %v1872_v59 }
0x1479   :  { %1880 = vst [vmem:[#allocation2 + $0x1] sm:$0x1] %v1877_v60 }
0x147a   :  { %1893 = dma.vmem_to_hbm [thread:$0]  %s1886_s7, 32, %s1888_s8, [#allocation3], %s2953_s1, %s2953_s1, %s2311_s13  }
0x147e   :  { %v1874_v61 = vpop.f32.mrf.mxu1 }
0x147f   :  { %2299 = dma.done.wait [#allocation3], 32  }
0x1480   :  { %2300 = vsyncadd [#allocation3], 4294967264 }
0x1481   :  { %1898 = vsyncpa [#allocation3], 1 }

</bundles_post_ra>
